<compile_context>
chip_gen: v7x
topology: tpu7x:2x2x1
jax: 0.10.0
libtpu: 0.0.40
codegen_flags: <defaults>
</compile_context>

<pallas_src>
import functools

import numpy as np
import jax
import jax.numpy as jnp
from jax.experimental import pallas as pl
from jax.experimental.pallas import tpu as pltpu

_NEG_SLOPE = 0.2
_TAPS = tuple((dy, dx) for dy in (-1, 0, 1) for dx in (-1, 0, 1))  # kh-major, kw-minor


def _build_tap_masks(H, W):
    """(9, 1, H*W) f32 masks: 1.0 where the (dy, dx) neighbour is in-bounds."""
    hh, ww = np.meshgrid(np.arange(H), np.arange(W), indexing="ij")
    masks = []
    for dy, dx in _TAPS:
        valid = (hh + dy >= 0) & (hh + dy < H) & (ww + dx >= 0) & (ww + dx < W)
        masks.append(valid.reshape(1, H * W).astype(np.float32))
    return jnp.asarray(np.stack(masks, axis=0))  # (9, 1, HW)


def _dense_block_kernel(mask_ref, x_ref, w1_ref, b1_ref, w2_ref, b2_ref,
                        w3_ref, b3_ref, o_ref, *, img_w, hw):
    """Refs:
      mask_ref: (9, 1, HW) f32        x_ref: (1, C_in, HW)
      wK_ref:   (9, C_outK, C_inK)    bK_ref: (C_outK, 1)
      o_ref:    (1, C_out, HW)
    """
    # Load the boundary masks once; reused by all three convolutions.
    masks = [mask_ref[k] for k in range(9)]  # each (1, HW) f32

    def conv3x3(a, w_ref_, b_ref_):
        # a: (C_in, HW) f32  ->  (C_out, HW) f32
        acc = None
        for k, (dy, dx) in enumerate(_TAPS):
            s = dy * img_w + dx
            if s == 0:
                shifted = a                       # centre tap: identity, mask == 1
            else:
                # Lane rotation on the XLU; positions that wrapped around the
                # image (or crossed a row boundary) are zeroed by the mask,
                # which reproduces zero padding of the 'same' convolution.
                shifted = pltpu.roll(a, (-s) % hw, 1) * masks[k]
            part = jnp.dot(w_ref_[k], shifted, preferred_element_type=jnp.float32)
            acc = part if acc is None else acc + part
        return acc + b_ref_[...]

    def leaky_relu(v):
        return jnp.where(v >= 0, v, _NEG_SLOPE * v)

    x = x_ref[0].astype(jnp.float32)                    # (C_in, HW)
    h = leaky_relu(conv3x3(x, w1_ref, b1_ref))          # (F, HW)
    h = leaky_relu(conv3x3(h, w2_ref, b2_ref))          # (F, HW)
    y = conv3x3(h, w3_ref, b3_ref)                      # (C_out, HW)
    o_ref[0] = y.astype(o_ref.dtype)


def dense_block_forward(x_nchw, params):
    """x_nchw: (N, C_in, H, W) f32. params: (w1, b1, w2, b2, w3, b3) torch-layout."""
    w1, b1, w2, b2, w3, b3 = params
    N, C_in, H, W = x_nchw.shape
    F = w1.shape[0]
    C_out = w3.shape[0]
    HW = H * W

    # Free (contiguous) reshape -- no transpose, no extra HBM pass.
    x_flat = x_nchw.reshape(N, C_in, HW)

    # Tiny constants: per-tap boundary masks and tap-major weight matrices.
    masks = _build_tap_masks(H, W)                                   # (9, 1, HW)
    w1_t = jnp.transpose(w1, (2, 3, 0, 1)).reshape(9, F, C_in)
    w2_t = jnp.transpose(w2, (2, 3, 0, 1)).reshape(9, F, F)
    w3_t = jnp.transpose(w3, (2, 3, 0, 1)).reshape(9, C_out, F)
    b1_c = b1.reshape(F, 1)
    b2_c = b2.reshape(F, 1)
    b3_c = b3.reshape(C_out, 1)

    kernel = functools.partial(_dense_block_kernel, img_w=W, hw=HW)

    flops = 2 * N * HW * 9 * (C_in * F + F * F + F * C_out)
    bytes_accessed = 4 * (x_flat.size + N * C_out * HW
                          + w1_t.size + w2_t.size + w3_t.size
                          + b1_c.size + b2_c.size + b3_c.size + masks.size)

    const = lambda n: (0, 0, 0)
    const2 = lambda n: (0, 0)

    out_flat = pl.pallas_call(
        kernel,
        out_shape=jax.ShapeDtypeStruct((N, C_out, HW), x_nchw.dtype),
        grid_spec=pltpu.PrefetchScalarGridSpec(
            num_scalar_prefetch=0,
            grid=(N,),
            in_specs=[
                pl.BlockSpec((9, 1, HW), const),                   # tap masks (grid-constant)
                pl.BlockSpec((1, C_in, HW), lambda n: (n, 0, 0)),  # x (lane-dense)
                pl.BlockSpec((9, F, C_in), const),                 # conv1 weight
                pl.BlockSpec((F, 1), const2),                      # conv1 bias
                pl.BlockSpec((9, F, F), const),                    # conv2 weight
                pl.BlockSpec((F, 1), const2),                      # conv2 bias
                pl.BlockSpec((9, C_out, F), const),                # conv3 weight
                pl.BlockSpec((C_out, 1), const2),                  # conv3 bias
            ],
            out_specs=pl.BlockSpec((1, C_out, HW), lambda n: (n, 0, 0)),
        ),
        compiler_params=pltpu.CompilerParams(
            dimension_semantics=("parallel",),
        ),
        cost_estimate=pl.CostEstimate(
            flops=flops, transcendentals=0, bytes_accessed=bytes_accessed),
    )(masks, x_flat, w1_t, b1_c, w2_t, b2_c, w3_t, b3_c)

    return out_flat.reshape(N, C_out, H, W)


# ----------------------------- pure-JAX reference -----------------------------

def _conv2d_same(x, w, b):
    y = jax.lax.conv_general_dilated(
        x, w, window_strides=(1, 1), padding=((1, 1), (1, 1)),
        dimension_numbers=("NCHW", "OIHW", "NCHW"),
        precision=jax.lax.Precision.HIGHEST)
    return y + b[None, :, None, None]


def dense_block_reference(x, params):
    w1, b1, w2, b2, w3, b3 = params
    h = _conv2d_same(x, w1, b1)
    h = jnp.where(h >= 0, h, _NEG_SLOPE * h)
    h = _conv2d_same(h, w2, b2)
    h = jnp.where(h >= 0, h, _NEG_SLOPE * h)
    return _conv2d_same(h, w3, b3)


if __name__ == "__main__":
    N, C_in, H, W = 2, 4, 16, 16
    FEAT, C_out = 32, 8

    key = jax.random.PRNGKey(0)
    ks = jax.random.split(key, 7)
    x = jax.random.normal(ks[0], (N, C_in, H, W), dtype=jnp.float32)
    w1 = 0.1 * jax.random.normal(ks[1], (FEAT, C_in, 3, 3), dtype=jnp.float32)
    b1 = 0.1 * jax.random.normal(ks[2], (FEAT,), dtype=jnp.float32)
    w2 = 0.1 * jax.random.normal(ks[3], (FEAT, FEAT, 3, 3), dtype=jnp.float32)
    b2 = 0.1 * jax.random.normal(ks[4], (FEAT,), dtype=jnp.float32)
    w3 = 0.1 * jax.random.normal(ks[5], (C_out, FEAT, 3, 3), dtype=jnp.float32)
    b3 = 0.1 * jax.random.normal(ks[6], (C_out,), dtype=jnp.float32)
    params = (w1, b1, w2, b2, w3, b3)

    y = dense_block_forward(x, params)
    y = jax.block_until_ready(y)

    y_ref = dense_block_reference(x, params)
    np.testing.assert_allclose(np.asarray(y), np.asarray(y_ref),
                               rtol=1e-3, atol=1e-3)

    print("KERNEL_OK")
</pallas_src>

<mosaic_0001>
module attributes {stable_mosaic.version = 11 : i64} {
  func.func @_dense_block_kernel(%arg0: i32, %arg1: memref<9x1x256xf32, #tpu.memory_space<vmem>>, %arg2: memref<1x4x256xf32, #tpu.memory_space<vmem>>, %arg3: memref<9x32x4xf32, #tpu.memory_space<vmem>>, %arg4: memref<32x1xf32, #tpu.memory_space<vmem>>, %arg5: memref<9x32x32xf32, #tpu.memory_space<vmem>>, %arg6: memref<32x1xf32, #tpu.memory_space<vmem>>, %arg7: memref<9x8x32xf32, #tpu.memory_space<vmem>>, %arg8: memref<8x1xf32, #tpu.memory_space<vmem>>, %arg9: memref<1x8x256xf32, #tpu.memory_space<vmem>>) attributes {dimension_semantics = [#tpu.dimension_semantics<parallel>], iteration_bounds = array<i64: 2>, scalar_prefetch = 0 : i64, scratch_operands = 0 : i64, tpu.core_type = #tpu.core_type<tc>, window_params = [{pipeline_mode = #tpu.pipeline_mode<synchronous>, transform_indices = @transform_0, window_bounds = array<i64: 9, 1, 256>}, {transform_indices = @transform_1, window_bounds = array<i64: 1, 4, 256>}, {pipeline_mode = #tpu.pipeline_mode<synchronous>, transform_indices = @transform_2, window_bounds = array<i64: 9, 32, 4>}, {pipeline_mode = #tpu.pipeline_mode<synchronous>, transform_indices = @transform_3, window_bounds = array<i64: 32, 1>}, {pipeline_mode = #tpu.pipeline_mode<synchronous>, transform_indices = @transform_4, window_bounds = array<i64: 9, 32, 32>}, {pipeline_mode = #tpu.pipeline_mode<synchronous>, transform_indices = @transform_5, window_bounds = array<i64: 32, 1>}, {pipeline_mode = #tpu.pipeline_mode<synchronous>, transform_indices = @transform_6, window_bounds = array<i64: 9, 8, 32>}, {pipeline_mode = #tpu.pipeline_mode<synchronous>, transform_indices = @transform_7, window_bounds = array<i64: 8, 1>}, {transform_indices = @transform_8, window_bounds = array<i64: 1, 8, 256>}]} {
    %c0 = arith.constant 0 : index
    %c0_0 = arith.constant 0 : index
    %c0_1 = arith.constant 0 : index
    %0 = vector.load %arg1[%c0, %c0_0, %c0_1] : memref<9x1x256xf32, #tpu.memory_space<vmem>>, vector<1x1x256xf32>
    %1 = vector.shape_cast %0 : vector<1x1x256xf32> to vector<1x256xf32>
    %c1 = arith.constant 1 : index
    %c0_2 = arith.constant 0 : index
    %c0_3 = arith.constant 0 : index
    %2 = vector.load %arg1[%c1, %c0_2, %c0_3] : memref<9x1x256xf32, #tpu.memory_space<vmem>>, vector<1x1x256xf32>
    %3 = vector.shape_cast %2 : vector<1x1x256xf32> to vector<1x256xf32>
    %c2 = arith.constant 2 : index
    %c0_4 = arith.constant 0 : index
    %c0_5 = arith.constant 0 : index
    %4 = vector.load %arg1[%c2, %c0_4, %c0_5] : memref<9x1x256xf32, #tpu.memory_space<vmem>>, vector<1x1x256xf32>
    %5 = vector.shape_cast %4 : vector<1x1x256xf32> to vector<1x256xf32>
    %c3 = arith.constant 3 : index
    %c0_6 = arith.constant 0 : index
    %c0_7 = arith.constant 0 : index
    %6 = vector.load %arg1[%c3, %c0_6, %c0_7] : memref<9x1x256xf32, #tpu.memory_space<vmem>>, vector<1x1x256xf32>
    %7 = vector.shape_cast %6 : vector<1x1x256xf32> to vector<1x256xf32>
    %c5 = arith.constant 5 : index
    %c0_8 = arith.constant 0 : index
    %c0_9 = arith.constant 0 : index
    %8 = vector.load %arg1[%c5, %c0_8, %c0_9] : memref<9x1x256xf32, #tpu.memory_space<vmem>>, vector<1x1x256xf32>
    %9 = vector.shape_cast %8 : vector<1x1x256xf32> to vector<1x256xf32>
    %c6 = arith.constant 6 : index
    %c0_10 = arith.constant 0 : index
    %c0_11 = arith.constant 0 : index
    %10 = vector.load %arg1[%c6, %c0_10, %c0_11] : memref<9x1x256xf32, #tpu.memory_space<vmem>>, vector<1x1x256xf32>
    %11 = vector.shape_cast %10 : vector<1x1x256xf32> to vector<1x256xf32>
    %c7 = arith.constant 7 : index
    %c0_12 = arith.constant 0 : index
    %c0_13 = arith.constant 0 : index
    %12 = vector.load %arg1[%c7, %c0_12, %c0_13] : memref<9x1x256xf32, #tpu.memory_space<vmem>>, vector<1x1x256xf32>
    %13 = vector.shape_cast %12 : vector<1x1x256xf32> to vector<1x256xf32>
    %c8 = arith.constant 8 : index
    %c0_14 = arith.constant 0 : index
    %c0_15 = arith.constant 0 : index
    %14 = vector.load %arg1[%c8, %c0_14, %c0_15] : memref<9x1x256xf32, #tpu.memory_space<vmem>>, vector<1x1x256xf32>
    %15 = vector.shape_cast %14 : vector<1x1x256xf32> to vector<1x256xf32>
    %c0_16 = arith.constant 0 : index
    %c0_17 = arith.constant 0 : index
    %c0_18 = arith.constant 0 : index
    %16 = vector.load %arg2[%c0_16, %c0_17, %c0_18] : memref<1x4x256xf32, #tpu.memory_space<vmem>>, vector<1x4x256xf32>
    %17 = vector.shape_cast %16 : vector<1x4x256xf32> to vector<4x256xf32>
    %c17_i32 = arith.constant 17 : i32
    %18 = tpu.dynamic_rotate %17 by %c17_i32 dim 1 : vector<4x256xf32>, i32 -> vector<4x256xf32>
    %19 = vector.broadcast %1 : vector<1x256xf32> to vector<4x256xf32>
    %20 = arith.mulf %18, %19 : vector<4x256xf32>
    %c0_19 = arith.constant 0 : index
    %c0_20 = arith.constant 0 : index
    %c0_21 = arith.constant 0 : index
    %21 = vector.load %arg3[%c0_19, %c0_20, %c0_21] : memref<9x32x4xf32, #tpu.memory_space<vmem>>, vector<1x32x4xf32>
    %22 = vector.shape_cast %21 : vector<1x32x4xf32> to vector<32x4xf32>
    %cst = arith.constant dense<0.000000e+00> : vector<32x256xf32>
    %23 = tpu.matmul %22, %20, %cst {dimension_numbers = #tpu.dot_dimension_numbers<[1], [0], [0], [1], [0, 0, 1, 1], [], []>} : vector<32x4xf32>, vector<4x256xf32>, vector<32x256xf32> -> vector<32x256xf32>
    %c16_i32 = arith.constant 16 : i32
    %24 = tpu.dynamic_rotate %17 by %c16_i32 dim 1 : vector<4x256xf32>, i32 -> vector<4x256xf32>
    %25 = vector.broadcast %3 : vector<1x256xf32> to vector<4x256xf32>
    %26 = arith.mulf %24, %25 : vector<4x256xf32>
    %c1_22 = arith.constant 1 : index
    %c0_23 = arith.constant 0 : index
    %c0_24 = arith.constant 0 : index
    %27 = vector.load %arg3[%c1_22, %c0_23, %c0_24] : memref<9x32x4xf32, #tpu.memory_space<vmem>>, vector<1x32x4xf32>
    %28 = vector.shape_cast %27 : vector<1x32x4xf32> to vector<32x4xf32>
    %cst_25 = arith.constant dense<0.000000e+00> : vector<32x256xf32>
    %29 = tpu.matmul %28, %26, %cst_25 {dimension_numbers = #tpu.dot_dimension_numbers<[1], [0], [0], [1], [0, 0, 1, 1], [], []>} : vector<32x4xf32>, vector<4x256xf32>, vector<32x256xf32> -> vector<32x256xf32>
    %30 = arith.addf %23, %29 : vector<32x256xf32>
    %c15_i32 = arith.constant 15 : i32
    %31 = tpu.dynamic_rotate %17 by %c15_i32 dim 1 : vector<4x256xf32>, i32 -> vector<4x256xf32>
    %32 = vector.broadcast %5 : vector<1x256xf32> to vector<4x256xf32>
    %33 = arith.mulf %31, %32 : vector<4x256xf32>
    %c2_26 = arith.constant 2 : index
    %c0_27 = arith.constant 0 : index
    %c0_28 = arith.constant 0 : index
    %34 = vector.load %arg3[%c2_26, %c0_27, %c0_28] : memref<9x32x4xf32, #tpu.memory_space<vmem>>, vector<1x32x4xf32>
    %35 = vector.shape_cast %34 : vector<1x32x4xf32> to vector<32x4xf32>
    %cst_29 = arith.constant dense<0.000000e+00> : vector<32x256xf32>
    %36 = tpu.matmul %35, %33, %cst_29 {dimension_numbers = #tpu.dot_dimension_numbers<[1], [0], [0], [1], [0, 0, 1, 1], [], []>} : vector<32x4xf32>, vector<4x256xf32>, vector<32x256xf32> -> vector<32x256xf32>
    %37 = arith.addf %30, %36 : vector<32x256xf32>
    %c1_i32 = arith.constant 1 : i32
    %38 = tpu.dynamic_rotate %17 by %c1_i32 dim 1 : vector<4x256xf32>, i32 -> vector<4x256xf32>
    %39 = vector.broadcast %7 : vector<1x256xf32> to vector<4x256xf32>
    %40 = arith.mulf %38, %39 : vector<4x256xf32>
    %c3_30 = arith.constant 3 : index
    %c0_31 = arith.constant 0 : index
    %c0_32 = arith.constant 0 : index
    %41 = vector.load %arg3[%c3_30, %c0_31, %c0_32] : memref<9x32x4xf32, #tpu.memory_space<vmem>>, vector<1x32x4xf32>
    %42 = vector.shape_cast %41 : vector<1x32x4xf32> to vector<32x4xf32>
    %cst_33 = arith.constant dense<0.000000e+00> : vector<32x256xf32>
    %43 = tpu.matmul %42, %40, %cst_33 {dimension_numbers = #tpu.dot_dimension_numbers<[1], [0], [0], [1], [0, 0, 1, 1], [], []>} : vector<32x4xf32>, vector<4x256xf32>, vector<32x256xf32> -> vector<32x256xf32>
    %44 = arith.addf %37, %43 : vector<32x256xf32>
    %c4 = arith.constant 4 : index
    %c0_34 = arith.constant 0 : index
    %c0_35 = arith.constant 0 : index
    %45 = vector.load %arg3[%c4, %c0_34, %c0_35] : memref<9x32x4xf32, #tpu.memory_space<vmem>>, vector<1x32x4xf32>
    %46 = vector.shape_cast %45 : vector<1x32x4xf32> to vector<32x4xf32>
    %cst_36 = arith.constant dense<0.000000e+00> : vector<32x256xf32>
    %47 = tpu.matmul %46, %17, %cst_36 {dimension_numbers = #tpu.dot_dimension_numbers<[1], [0], [0], [1], [0, 0, 1, 1], [], []>} : vector<32x4xf32>, vector<4x256xf32>, vector<32x256xf32> -> vector<32x256xf32>
    %48 = arith.addf %44, %47 : vector<32x256xf32>
    %c255_i32 = arith.constant 255 : i32
    %49 = tpu.dynamic_rotate %17 by %c255_i32 dim 1 : vector<4x256xf32>, i32 -> vector<4x256xf32>
    %50 = vector.broadcast %9 : vector<1x256xf32> to vector<4x256xf32>
    %51 = arith.mulf %49, %50 : vector<4x256xf32>
    %c5_37 = arith.constant 5 : index
    %c0_38 = arith.constant 0 : index
    %c0_39 = arith.constant 0 : index
    %52 = vector.load %arg3[%c5_37, %c0_38, %c0_39] : memref<9x32x4xf32, #tpu.memory_space<vmem>>, vector<1x32x4xf32>
    %53 = vector.shape_cast %52 : vector<1x32x4xf32> to vector<32x4xf32>
    %cst_40 = arith.constant dense<0.000000e+00> : vector<32x256xf32>
    %54 = tpu.matmul %53, %51, %cst_40 {dimension_numbers = #tpu.dot_dimension_numbers<[1], [0], [0], [1], [0, 0, 1, 1], [], []>} : vector<32x4xf32>, vector<4x256xf32>, vector<32x256xf32> -> vector<32x256xf32>
    %55 = arith.addf %48, %54 : vector<32x256xf32>
    %c241_i32 = arith.constant 241 : i32
    %56 = tpu.dynamic_rotate %17 by %c241_i32 dim 1 : vector<4x256xf32>, i32 -> vector<4x256xf32>
    %57 = vector.broadcast %11 : vector<1x256xf32> to vector<4x256xf32>
    %58 = arith.mulf %56, %57 : vector<4x256xf32>
    %c6_41 = arith.constant 6 : index
    %c0_42 = arith.constant 0 : index
    %c0_43 = arith.constant 0 : index
    %59 = vector.load %arg3[%c6_41, %c0_42, %c0_43] : memref<9x32x4xf32, #tpu.memory_space<vmem>>, vector<1x32x4xf32>
    %60 = vector.shape_cast %59 : vector<1x32x4xf32> to vector<32x4xf32>
    %cst_44 = arith.constant dense<0.000000e+00> : vector<32x256xf32>
    %61 = tpu.matmul %60, %58, %cst_44 {dimension_numbers = #tpu.dot_dimension_numbers<[1], [0], [0], [1], [0, 0, 1, 1], [], []>} : vector<32x4xf32>, vector<4x256xf32>, vector<32x256xf32> -> vector<32x256xf32>
    %62 = arith.addf %55, %61 : vector<32x256xf32>
    %c240_i32 = arith.constant 240 : i32
    %63 = tpu.dynamic_rotate %17 by %c240_i32 dim 1 : vector<4x256xf32>, i32 -> vector<4x256xf32>
    %64 = vector.broadcast %13 : vector<1x256xf32> to vector<4x256xf32>
    %65 = arith.mulf %63, %64 : vector<4x256xf32>
    %c7_45 = arith.constant 7 : index
    %c0_46 = arith.constant 0 : index
    %c0_47 = arith.constant 0 : index
    %66 = vector.load %arg3[%c7_45, %c0_46, %c0_47] : memref<9x32x4xf32, #tpu.memory_space<vmem>>, vector<1x32x4xf32>
    %67 = vector.shape_cast %66 : vector<1x32x4xf32> to vector<32x4xf32>
    %cst_48 = arith.constant dense<0.000000e+00> : vector<32x256xf32>
    %68 = tpu.matmul %67, %65, %cst_48 {dimension_numbers = #tpu.dot_dimension_numbers<[1], [0], [0], [1], [0, 0, 1, 1], [], []>} : vector<32x4xf32>, vector<4x256xf32>, vector<32x256xf32> -> vector<32x256xf32>
    %69 = arith.addf %62, %68 : vector<32x256xf32>
    %c239_i32 = arith.constant 239 : i32
    %70 = tpu.dynamic_rotate %17 by %c239_i32 dim 1 : vector<4x256xf32>, i32 -> vector<4x256xf32>
    %71 = vector.broadcast %15 : vector<1x256xf32> to vector<4x256xf32>
    %72 = arith.mulf %70, %71 : vector<4x256xf32>
    %c8_49 = arith.constant 8 : index
    %c0_50 = arith.constant 0 : index
    %c0_51 = arith.constant 0 : index
    %73 = vector.load %arg3[%c8_49, %c0_50, %c0_51] : memref<9x32x4xf32, #tpu.memory_space<vmem>>, vector<1x32x4xf32>
    %74 = vector.shape_cast %73 : vector<1x32x4xf32> to vector<32x4xf32>
    %cst_52 = arith.constant dense<0.000000e+00> : vector<32x256xf32>
    %75 = tpu.matmul %74, %72, %cst_52 {dimension_numbers = #tpu.dot_dimension_numbers<[1], [0], [0], [1], [0, 0, 1, 1], [], []>} : vector<32x4xf32>, vector<4x256xf32>, vector<32x256xf32> -> vector<32x256xf32>
    %76 = arith.addf %69, %75 : vector<32x256xf32>
    %c0_53 = arith.constant 0 : index
    %c0_54 = arith.constant 0 : index
    %77 = vector.load %arg4[%c0_53, %c0_54] : memref<32x1xf32, #tpu.memory_space<vmem>>, vector<32x1xf32>
    %78 = vector.broadcast %77 : vector<32x1xf32> to vector<32x256xf32>
    %79 = arith.addf %76, %78 : vector<32x256xf32>
    %cst_55 = arith.constant 0.000000e+00 : f32
    %80 = vector.broadcast %cst_55 : f32 to vector<32x256xf32>
    %81 = arith.cmpf oge, %79, %80 : vector<32x256xf32>
    %cst_56 = arith.constant 2.000000e-01 : f32
    %82 = vector.broadcast %cst_56 : f32 to vector<32x256xf32>
    %83 = arith.mulf %82, %79 : vector<32x256xf32>
    %84 = arith.select %81, %79, %83 : vector<32x256xi1>, vector<32x256xf32>
    %c17_i32_57 = arith.constant 17 : i32
    %85 = tpu.dynamic_rotate %84 by %c17_i32_57 dim 1 : vector<32x256xf32>, i32 -> vector<32x256xf32>
    %86 = vector.broadcast %1 : vector<1x256xf32> to vector<32x256xf32>
    %87 = arith.mulf %85, %86 : vector<32x256xf32>
    %c0_58 = arith.constant 0 : index
    %c0_59 = arith.constant 0 : index
    %c0_60 = arith.constant 0 : index
    %88 = vector.load %arg5[%c0_58, %c0_59, %c0_60] : memref<9x32x32xf32, #tpu.memory_space<vmem>>, vector<1x32x32xf32>
    %89 = vector.shape_cast %88 : vector<1x32x32xf32> to vector<32x32xf32>
    %cst_61 = arith.constant dense<0.000000e+00> : vector<32x256xf32>
    %90 = tpu.matmul %89, %87, %cst_61 {dimension_numbers = #tpu.dot_dimension_numbers<[1], [0], [0], [1], [0, 0, 1, 1], [], []>} : vector<32x32xf32>, vector<32x256xf32>, vector<32x256xf32> -> vector<32x256xf32>
    %c16_i32_62 = arith.constant 16 : i32
    %91 = tpu.dynamic_rotate %84 by %c16_i32_62 dim 1 : vector<32x256xf32>, i32 -> vector<32x256xf32>
    %92 = vector.broadcast %3 : vector<1x256xf32> to vector<32x256xf32>
    %93 = arith.mulf %91, %92 : vector<32x256xf32>
    %c1_63 = arith.constant 1 : index
    %c0_64 = arith.constant 0 : index
    %c0_65 = arith.constant 0 : index
    %94 = vector.load %arg5[%c1_63, %c0_64, %c0_65] : memref<9x32x32xf32, #tpu.memory_space<vmem>>, vector<1x32x32xf32>
    %95 = vector.shape_cast %94 : vector<1x32x32xf32> to vector<32x32xf32>
    %cst_66 = arith.constant dense<0.000000e+00> : vector<32x256xf32>
    %96 = tpu.matmul %95, %93, %cst_66 {dimension_numbers = #tpu.dot_dimension_numbers<[1], [0], [0], [1], [0, 0, 1, 1], [], []>} : vector<32x32xf32>, vector<32x256xf32>, vector<32x256xf32> -> vector<32x256xf32>
    %97 = arith.addf %90, %96 : vector<32x256xf32>
    %c15_i32_67 = arith.constant 15 : i32
    %98 = tpu.dynamic_rotate %84 by %c15_i32_67 dim 1 : vector<32x256xf32>, i32 -> vector<32x256xf32>
    %99 = vector.broadcast %5 : vector<1x256xf32> to vector<32x256xf32>
    %100 = arith.mulf %98, %99 : vector<32x256xf32>
    %c2_68 = arith.constant 2 : index
    %c0_69 = arith.constant 0 : index
    %c0_70 = arith.constant 0 : index
    %101 = vector.load %arg5[%c2_68, %c0_69, %c0_70] : memref<9x32x32xf32, #tpu.memory_space<vmem>>, vector<1x32x32xf32>
    %102 = vector.shape_cast %101 : vector<1x32x32xf32> to vector<32x32xf32>
    %cst_71 = arith.constant dense<0.000000e+00> : vector<32x256xf32>
    %103 = tpu.matmul %102, %100, %cst_71 {dimension_numbers = #tpu.dot_dimension_numbers<[1], [0], [0], [1], [0, 0, 1, 1], [], []>} : vector<32x32xf32>, vector<32x256xf32>, vector<32x256xf32> -> vector<32x256xf32>
    %104 = arith.addf %97, %103 : vector<32x256xf32>
    %c1_i32_72 = arith.constant 1 : i32
    %105 = tpu.dynamic_rotate %84 by %c1_i32_72 dim 1 : vector<32x256xf32>, i32 -> vector<32x256xf32>
    %106 = vector.broadcast %7 : vector<1x256xf32> to vector<32x256xf32>
    %107 = arith.mulf %105, %106 : vector<32x256xf32>
    %c3_73 = arith.constant 3 : index
    %c0_74 = arith.constant 0 : index
    %c0_75 = arith.constant 0 : index
    %108 = vector.load %arg5[%c3_73, %c0_74, %c0_75] : memref<9x32x32xf32, #tpu.memory_space<vmem>>, vector<1x32x32xf32>
    %109 = vector.shape_cast %108 : vector<1x32x32xf32> to vector<32x32xf32>
    %cst_76 = arith.constant dense<0.000000e+00> : vector<32x256xf32>
    %110 = tpu.matmul %109, %107, %cst_76 {dimension_numbers = #tpu.dot_dimension_numbers<[1], [0], [0], [1], [0, 0, 1, 1], [], []>} : vector<32x32xf32>, vector<32x256xf32>, vector<32x256xf32> -> vector<32x256xf32>
    %111 = arith.addf %104, %110 : vector<32x256xf32>
    %c4_77 = arith.constant 4 : index
    %c0_78 = arith.constant 0 : index
    %c0_79 = arith.constant 0 : index
    %112 = vector.load %arg5[%c4_77, %c0_78, %c0_79] : memref<9x32x32xf32, #tpu.memory_space<vmem>>, vector<1x32x32xf32>
    %113 = vector.shape_cast %112 : vector<1x32x32xf32> to vector<32x32xf32>
    %cst_80 = arith.constant dense<0.000000e+00> : vector<32x256xf32>
    %114 = tpu.matmul %113, %84, %cst_80 {dimension_numbers = #tpu.dot_dimension_numbers<[1], [0], [0], [1], [0, 0, 1, 1], [], []>} : vector<32x32xf32>, vector<32x256xf32>, vector<32x256xf32> -> vector<32x256xf32>
    %115 = arith.addf %111, %114 : vector<32x256xf32>
    %c255_i32_81 = arith.constant 255 : i32
    %116 = tpu.dynamic_rotate %84 by %c255_i32_81 dim 1 : vector<32x256xf32>, i32 -> vector<32x256xf32>
    %117 = vector.broadcast %9 : vector<1x256xf32> to vector<32x256xf32>
    %118 = arith.mulf %116, %117 : vector<32x256xf32>
    %c5_82 = arith.constant 5 : index
    %c0_83 = arith.constant 0 : index
    %c0_84 = arith.constant 0 : index
    %119 = vector.load %arg5[%c5_82, %c0_83, %c0_84] : memref<9x32x32xf32, #tpu.memory_space<vmem>>, vector<1x32x32xf32>
    %120 = vector.shape_cast %119 : vector<1x32x32xf32> to vector<32x32xf32>
    %cst_85 = arith.constant dense<0.000000e+00> : vector<32x256xf32>
    %121 = tpu.matmul %120, %118, %cst_85 {dimension_numbers = #tpu.dot_dimension_numbers<[1], [0], [0], [1], [0, 0, 1, 1], [], []>} : vector<32x32xf32>, vector<32x256xf32>, vector<32x256xf32> -> vector<32x256xf32>
    %122 = arith.addf %115, %121 : vector<32x256xf32>
    %c241_i32_86 = arith.constant 241 : i32
    %123 = tpu.dynamic_rotate %84 by %c241_i32_86 dim 1 : vector<32x256xf32>, i32 -> vector<32x256xf32>
    %124 = vector.broadcast %11 : vector<1x256xf32> to vector<32x256xf32>
    %125 = arith.mulf %123, %124 : vector<32x256xf32>
    %c6_87 = arith.constant 6 : index
    %c0_88 = arith.constant 0 : index
    %c0_89 = arith.constant 0 : index
    %126 = vector.load %arg5[%c6_87, %c0_88, %c0_89] : memref<9x32x32xf32, #tpu.memory_space<vmem>>, vector<1x32x32xf32>
    %127 = vector.shape_cast %126 : vector<1x32x32xf32> to vector<32x32xf32>
    %cst_90 = arith.constant dense<0.000000e+00> : vector<32x256xf32>
    %128 = tpu.matmul %127, %125, %cst_90 {dimension_numbers = #tpu.dot_dimension_numbers<[1], [0], [0], [1], [0, 0, 1, 1], [], []>} : vector<32x32xf32>, vector<32x256xf32>, vector<32x256xf32> -> vector<32x256xf32>
    %129 = arith.addf %122, %128 : vector<32x256xf32>
    %c240_i32_91 = arith.constant 240 : i32
    %130 = tpu.dynamic_rotate %84 by %c240_i32_91 dim 1 : vector<32x256xf32>, i32 -> vector<32x256xf32>
    %131 = vector.broadcast %13 : vector<1x256xf32> to vector<32x256xf32>
    %132 = arith.mulf %130, %131 : vector<32x256xf32>
    %c7_92 = arith.constant 7 : index
    %c0_93 = arith.constant 0 : index
    %c0_94 = arith.constant 0 : index
    %133 = vector.load %arg5[%c7_92, %c0_93, %c0_94] : memref<9x32x32xf32, #tpu.memory_space<vmem>>, vector<1x32x32xf32>
    %134 = vector.shape_cast %133 : vector<1x32x32xf32> to vector<32x32xf32>
    %cst_95 = arith.constant dense<0.000000e+00> : vector<32x256xf32>
    %135 = tpu.matmul %134, %132, %cst_95 {dimension_numbers = #tpu.dot_dimension_numbers<[1], [0], [0], [1], [0, 0, 1, 1], [], []>} : vector<32x32xf32>, vector<32x256xf32>, vector<32x256xf32> -> vector<32x256xf32>
    %136 = arith.addf %129, %135 : vector<32x256xf32>
    %c239_i32_96 = arith.constant 239 : i32
    %137 = tpu.dynamic_rotate %84 by %c239_i32_96 dim 1 : vector<32x256xf32>, i32 -> vector<32x256xf32>
    %138 = vector.broadcast %15 : vector<1x256xf32> to vector<32x256xf32>
    %139 = arith.mulf %137, %138 : vector<32x256xf32>
    %c8_97 = arith.constant 8 : index
    %c0_98 = arith.constant 0 : index
    %c0_99 = arith.constant 0 : index
    %140 = vector.load %arg5[%c8_97, %c0_98, %c0_99] : memref<9x32x32xf32, #tpu.memory_space<vmem>>, vector<1x32x32xf32>
    %141 = vector.shape_cast %140 : vector<1x32x32xf32> to vector<32x32xf32>
    %cst_100 = arith.constant dense<0.000000e+00> : vector<32x256xf32>
    %142 = tpu.matmul %141, %139, %cst_100 {dimension_numbers = #tpu.dot_dimension_numbers<[1], [0], [0], [1], [0, 0, 1, 1], [], []>} : vector<32x32xf32>, vector<32x256xf32>, vector<32x256xf32> -> vector<32x256xf32>
    %143 = arith.addf %136, %142 : vector<32x256xf32>
    %c0_101 = arith.constant 0 : index
    %c0_102 = arith.constant 0 : index
    %144 = vector.load %arg6[%c0_101, %c0_102] : memref<32x1xf32, #tpu.memory_space<vmem>>, vector<32x1xf32>
    %145 = vector.broadcast %144 : vector<32x1xf32> to vector<32x256xf32>
    %146 = arith.addf %143, %145 : vector<32x256xf32>
    %cst_103 = arith.constant 0.000000e+00 : f32
    %147 = vector.broadcast %cst_103 : f32 to vector<32x256xf32>
    %148 = arith.cmpf oge, %146, %147 : vector<32x256xf32>
    %cst_104 = arith.constant 2.000000e-01 : f32
    %149 = vector.broadcast %cst_104 : f32 to vector<32x256xf32>
    %150 = arith.mulf %149, %146 : vector<32x256xf32>
    %151 = arith.select %148, %146, %150 : vector<32x256xi1>, vector<32x256xf32>
    %c17_i32_105 = arith.constant 17 : i32
    %152 = tpu.dynamic_rotate %151 by %c17_i32_105 dim 1 : vector<32x256xf32>, i32 -> vector<32x256xf32>
    %153 = vector.broadcast %1 : vector<1x256xf32> to vector<32x256xf32>
    %154 = arith.mulf %152, %153 : vector<32x256xf32>
    %c0_106 = arith.constant 0 : index
    %c0_107 = arith.constant 0 : index
    %c0_108 = arith.constant 0 : index
    %155 = vector.load %arg7[%c0_106, %c0_107, %c0_108] : memref<9x8x32xf32, #tpu.memory_space<vmem>>, vector<1x8x32xf32>
    %156 = vector.shape_cast %155 : vector<1x8x32xf32> to vector<8x32xf32>
    %cst_109 = arith.constant dense<0.000000e+00> : vector<8x256xf32>
    %157 = tpu.matmul %156, %154, %cst_109 {dimension_numbers = #tpu.dot_dimension_numbers<[1], [0], [0], [1], [0, 0, 1, 1], [], []>} : vector<8x32xf32>, vector<32x256xf32>, vector<8x256xf32> -> vector<8x256xf32>
    %c16_i32_110 = arith.constant 16 : i32
    %158 = tpu.dynamic_rotate %151 by %c16_i32_110 dim 1 : vector<32x256xf32>, i32 -> vector<32x256xf32>
    %159 = vector.broadcast %3 : vector<1x256xf32> to vector<32x256xf32>
    %160 = arith.mulf %158, %159 : vector<32x256xf32>
    %c1_111 = arith.constant 1 : index
    %c0_112 = arith.constant 0 : index
    %c0_113 = arith.constant 0 : index
    %161 = vector.load %arg7[%c1_111, %c0_112, %c0_113] : memref<9x8x32xf32, #tpu.memory_space<vmem>>, vector<1x8x32xf32>
    %162 = vector.shape_cast %161 : vector<1x8x32xf32> to vector<8x32xf32>
    %cst_114 = arith.constant dense<0.000000e+00> : vector<8x256xf32>
    %163 = tpu.matmul %162, %160, %cst_114 {dimension_numbers = #tpu.dot_dimension_numbers<[1], [0], [0], [1], [0, 0, 1, 1], [], []>} : vector<8x32xf32>, vector<32x256xf32>, vector<8x256xf32> -> vector<8x256xf32>
    %164 = arith.addf %157, %163 : vector<8x256xf32>
    %c15_i32_115 = arith.constant 15 : i32
    %165 = tpu.dynamic_rotate %151 by %c15_i32_115 dim 1 : vector<32x256xf32>, i32 -> vector<32x256xf32>
    %166 = vector.broadcast %5 : vector<1x256xf32> to vector<32x256xf32>
    %167 = arith.mulf %165, %166 : vector<32x256xf32>
    %c2_116 = arith.constant 2 : index
    %c0_117 = arith.constant 0 : index
    %c0_118 = arith.constant 0 : index
    %168 = vector.load %arg7[%c2_116, %c0_117, %c0_118] : memref<9x8x32xf32, #tpu.memory_space<vmem>>, vector<1x8x32xf32>
    %169 = vector.shape_cast %168 : vector<1x8x32xf32> to vector<8x32xf32>
    %cst_119 = arith.constant dense<0.000000e+00> : vector<8x256xf32>
    %170 = tpu.matmul %169, %167, %cst_119 {dimension_numbers = #tpu.dot_dimension_numbers<[1], [0], [0], [1], [0, 0, 1, 1], [], []>} : vector<8x32xf32>, vector<32x256xf32>, vector<8x256xf32> -> vector<8x256xf32>
    %171 = arith.addf %164, %170 : vector<8x256xf32>
    %c1_i32_120 = arith.constant 1 : i32
    %172 = tpu.dynamic_rotate %151 by %c1_i32_120 dim 1 : vector<32x256xf32>, i32 -> vector<32x256xf32>
    %173 = vector.broadcast %7 : vector<1x256xf32> to vector<32x256xf32>
    %174 = arith.mulf %172, %173 : vector<32x256xf32>
    %c3_121 = arith.constant 3 : index
    %c0_122 = arith.constant 0 : index
    %c0_123 = arith.constant 0 : index
    %175 = vector.load %arg7[%c3_121, %c0_122, %c0_123] : memref<9x8x32xf32, #tpu.memory_space<vmem>>, vector<1x8x32xf32>
    %176 = vector.shape_cast %175 : vector<1x8x32xf32> to vector<8x32xf32>
    %cst_124 = arith.constant dense<0.000000e+00> : vector<8x256xf32>
    %177 = tpu.matmul %176, %174, %cst_124 {dimension_numbers = #tpu.dot_dimension_numbers<[1], [0], [0], [1], [0, 0, 1, 1], [], []>} : vector<8x32xf32>, vector<32x256xf32>, vector<8x256xf32> -> vector<8x256xf32>
    %178 = arith.addf %171, %177 : vector<8x256xf32>
    %c4_125 = arith.constant 4 : index
    %c0_126 = arith.constant 0 : index
    %c0_127 = arith.constant 0 : index
    %179 = vector.load %arg7[%c4_125, %c0_126, %c0_127] : memref<9x8x32xf32, #tpu.memory_space<vmem>>, vector<1x8x32xf32>
    %180 = vector.shape_cast %179 : vector<1x8x32xf32> to vector<8x32xf32>
    %cst_128 = arith.constant dense<0.000000e+00> : vector<8x256xf32>
    %181 = tpu.matmul %180, %151, %cst_128 {dimension_numbers = #tpu.dot_dimension_numbers<[1], [0], [0], [1], [0, 0, 1, 1], [], []>} : vector<8x32xf32>, vector<32x256xf32>, vector<8x256xf32> -> vector<8x256xf32>
    %182 = arith.addf %178, %181 : vector<8x256xf32>
    %c255_i32_129 = arith.constant 255 : i32
    %183 = tpu.dynamic_rotate %151 by %c255_i32_129 dim 1 : vector<32x256xf32>, i32 -> vector<32x256xf32>
    %184 = vector.broadcast %9 : vector<1x256xf32> to vector<32x256xf32>
    %185 = arith.mulf %183, %184 : vector<32x256xf32>
    %c5_130 = arith.constant 5 : index
    %c0_131 = arith.constant 0 : index
    %c0_132 = arith.constant 0 : index
    %186 = vector.load %arg7[%c5_130, %c0_131, %c0_132] : memref<9x8x32xf32, #tpu.memory_space<vmem>>, vector<1x8x32xf32>
    %187 = vector.shape_cast %186 : vector<1x8x32xf32> to vector<8x32xf32>
    %cst_133 = arith.constant dense<0.000000e+00> : vector<8x256xf32>
    %188 = tpu.matmul %187, %185, %cst_133 {dimension_numbers = #tpu.dot_dimension_numbers<[1], [0], [0], [1], [0, 0, 1, 1], [], []>} : vector<8x32xf32>, vector<32x256xf32>, vector<8x256xf32> -> vector<8x256xf32>
    %189 = arith.addf %182, %188 : vector<8x256xf32>
    %c241_i32_134 = arith.constant 241 : i32
    %190 = tpu.dynamic_rotate %151 by %c241_i32_134 dim 1 : vector<32x256xf32>, i32 -> vector<32x256xf32>
    %191 = vector.broadcast %11 : vector<1x256xf32> to vector<32x256xf32>
    %192 = arith.mulf %190, %191 : vector<32x256xf32>
    %c6_135 = arith.constant 6 : index
    %c0_136 = arith.constant 0 : index
    %c0_137 = arith.constant 0 : index
    %193 = vector.load %arg7[%c6_135, %c0_136, %c0_137] : memref<9x8x32xf32, #tpu.memory_space<vmem>>, vector<1x8x32xf32>
    %194 = vector.shape_cast %193 : vector<1x8x32xf32> to vector<8x32xf32>
    %cst_138 = arith.constant dense<0.000000e+00> : vector<8x256xf32>
    %195 = tpu.matmul %194, %192, %cst_138 {dimension_numbers = #tpu.dot_dimension_numbers<[1], [0], [0], [1], [0, 0, 1, 1], [], []>} : vector<8x32xf32>, vector<32x256xf32>, vector<8x256xf32> -> vector<8x256xf32>
    %196 = arith.addf %189, %195 : vector<8x256xf32>
    %c240_i32_139 = arith.constant 240 : i32
    %197 = tpu.dynamic_rotate %151 by %c240_i32_139 dim 1 : vector<32x256xf32>, i32 -> vector<32x256xf32>
    %198 = vector.broadcast %13 : vector<1x256xf32> to vector<32x256xf32>
    %199 = arith.mulf %197, %198 : vector<32x256xf32>
    %c7_140 = arith.constant 7 : index
    %c0_141 = arith.constant 0 : index
    %c0_142 = arith.constant 0 : index
    %200 = vector.load %arg7[%c7_140, %c0_141, %c0_142] : memref<9x8x32xf32, #tpu.memory_space<vmem>>, vector<1x8x32xf32>
    %201 = vector.shape_cast %200 : vector<1x8x32xf32> to vector<8x32xf32>
    %cst_143 = arith.constant dense<0.000000e+00> : vector<8x256xf32>
    %202 = tpu.matmul %201, %199, %cst_143 {dimension_numbers = #tpu.dot_dimension_numbers<[1], [0], [0], [1], [0, 0, 1, 1], [], []>} : vector<8x32xf32>, vector<32x256xf32>, vector<8x256xf32> -> vector<8x256xf32>
    %203 = arith.addf %196, %202 : vector<8x256xf32>
    %c239_i32_144 = arith.constant 239 : i32
    %204 = tpu.dynamic_rotate %151 by %c239_i32_144 dim 1 : vector<32x256xf32>, i32 -> vector<32x256xf32>
    %205 = vector.broadcast %15 : vector<1x256xf32> to vector<32x256xf32>
    %206 = arith.mulf %204, %205 : vector<32x256xf32>
    %c8_145 = arith.constant 8 : index
    %c0_146 = arith.constant 0 : index
    %c0_147 = arith.constant 0 : index
    %207 = vector.load %arg7[%c8_145, %c0_146, %c0_147] : memref<9x8x32xf32, #tpu.memory_space<vmem>>, vector<1x8x32xf32>
    %208 = vector.shape_cast %207 : vector<1x8x32xf32> to vector<8x32xf32>
    %cst_148 = arith.constant dense<0.000000e+00> : vector<8x256xf32>
    %209 = tpu.matmul %208, %206, %cst_148 {dimension_numbers = #tpu.dot_dimension_numbers<[1], [0], [0], [1], [0, 0, 1, 1], [], []>} : vector<8x32xf32>, vector<32x256xf32>, vector<8x256xf32> -> vector<8x256xf32>
    %210 = arith.addf %203, %209 : vector<8x256xf32>
    %c0_149 = arith.constant 0 : index
    %c0_150 = arith.constant 0 : index
    %211 = vector.load %arg8[%c0_149, %c0_150] : memref<8x1xf32, #tpu.memory_space<vmem>>, vector<8x1xf32>
    %212 = vector.broadcast %211 : vector<8x1xf32> to vector<8x256xf32>
    %213 = arith.addf %210, %212 : vector<8x256xf32>
    %c0_151 = arith.constant 0 : index
    %c0_152 = arith.constant 0 : index
    %c0_153 = arith.constant 0 : index
    %214 = vector.load %arg9[%c0_151, %c0_152, %c0_153] : memref<1x8x256xf32, #tpu.memory_space<vmem>>, vector<1x8x256xf32>
    %215 = vector.shape_cast %214 : vector<1x8x256xf32> to vector<8x256xf32>
    %216 = vector.shape_cast %213 : vector<8x256xf32> to vector<1x8x256xf32>
    tpu.vector_store %arg9[%c0_151, %c0_152, %c0_153], %216 {strides = array<i32>} : memref<1x8x256xf32, #tpu.memory_space<vmem>>, vector<1x8x256xf32>,
    return
  }
  func.func @transform_0(%arg0: i32) -> (i32, i32, i32) {
    %c0_i32 = arith.constant 0 : i32
    %c0_i32_0 = arith.constant 0 : i32
    %c0_i32_1 = arith.constant 0 : i32
    %c0_i32_2 = arith.constant 0 : i32
    return %c0_i32, %c0_i32_0, %c0_i32_1 : i32, i32, i32
  }
  func.func @transform_1(%arg0: i32) -> (i32, i32, i32) {
    %c0_i32 = arith.constant 0 : i32
    %c0_i32_0 = arith.constant 0 : i32
    %c0_i32_1 = arith.constant 0 : i32
    return %arg0, %c0_i32, %c0_i32_0 : i32, i32, i32
  }
  func.func @transform_2(%arg0: i32) -> (i32, i32, i32) {
    %c0_i32 = arith.constant 0 : i32
    %c0_i32_0 = arith.constant 0 : i32
    %c0_i32_1 = arith.constant 0 : i32
    %c0_i32_2 = arith.constant 0 : i32
    return %c0_i32, %c0_i32_0, %c0_i32_1 : i32, i32, i32
  }
  func.func @transform_3(%arg0: i32) -> (i32, i32) {
    %c0_i32 = arith.constant 0 : i32
    %c0_i32_0 = arith.constant 0 : i32
    %c0_i32_1 = arith.constant 0 : i32
    return %c0_i32, %c0_i32_0 : i32, i32
  }
  func.func @transform_4(%arg0: i32) -> (i32, i32, i32) {
    %c0_i32 = arith.constant 0 : i32
    %c0_i32_0 = arith.constant 0 : i32
    %c0_i32_1 = arith.constant 0 : i32
    %c0_i32_2 = arith.constant 0 : i32
    return %c0_i32, %c0_i32_0, %c0_i32_1 : i32, i32, i32
  }
  func.func @transform_5(%arg0: i32) -> (i32, i32) {
    %c0_i32 = arith.constant 0 : i32
    %c0_i32_0 = arith.constant 0 : i32
    %c0_i32_1 = arith.constant 0 : i32
    return %c0_i32, %c0_i32_0 : i32, i32
  }
  func.func @transform_6(%arg0: i32) -> (i32, i32, i32) {
    %c0_i32 = arith.constant 0 : i32
    %c0_i32_0 = arith.constant 0 : i32
    %c0_i32_1 = arith.constant 0 : i32
    %c0_i32_2 = arith.constant 0 : i32
    return %c0_i32, %c0_i32_0, %c0_i32_1 : i32, i32, i32
  }
  func.func @transform_7(%arg0: i32) -> (i32, i32) {
    %c0_i32 = arith.constant 0 : i32
    %c0_i32_0 = arith.constant 0 : i32
    %c0_i32_1 = arith.constant 0 : i32
    return %c0_i32, %c0_i32_0 : i32, i32
  }
  func.func @transform_8(%arg0: i32) -> (i32, i32, i32) {
    %c0_i32 = arith.constant 0 : i32
    %c0_i32_0 = arith.constant 0 : i32
    %c0_i32_1 = arith.constant 0 : i32
    return %arg0, %c0_i32, %c0_i32_0 : i32, i32, i32
  }
}

</mosaic_0001>

<bundles_post_ra>
// kernel: tpu_custom_call.1
= control target key start
LH: loop header
LB: loop body
LE: loop exit
PB: predicated region body
PF: predicated region fallthrough
CT: control target
= control target key end

     0   :  { %13 = vsyncpa [#allocation3], 0  ;;  %s6168_s0 = inlined_call_operand.vmem [shape: f32[9,1,256], index: 0, kind: input, shape index: {}]   ;;  %s6169_s1 = inlined_call_operand.vmem [shape: f32[2,4,256], index: 1, kind: input, shape index: {}]   ;;  %s6170_s2 = inlined_call_operand.vmem [shape: f32[9,32,4], index: 2, kind: input, shape index: {}]   ;;  %s6171_s3 = inlined_call_operand.vmem [shape: f32[32,1], index: 3, kind: input, shape index: {}]   ;;  %s6172_s4 = inlined_call_operand.vmem [shape: f32[9,32,32], index: 4, kind: input, shape index: {}]   ;;  %s6173_s5 = inlined_call_operand.vmem [shape: f32[32,1], index: 5, kind: input, shape index: {}]   ;;  %s6174_s6 = inlined_call_operand.vmem [shape: f32[9,8,32], index: 6, kind: input, shape index: {}]   ;;  %s6175_s7 = inlined_call_operand.vmem [shape: f32[8,1], index: 7, kind: input, shape index: {}]   ;;  %s6176_s8 = inlined_call_operand.hbm [shape: f32[2,8,256], index: 8, kind: output, shape index: {}]  }
   0x1   :  { %15 = vsyncpa [#allocation3 + $0x1], 0  ;;  %s4615_s27 = smov 0   ;;  %s4617_s28 = smov 0  }
   0x2   :  { %s4619_s29 = smov 0   ;;  %s4621_s30 = smov 0  }
   0x3 LB: > { %s4636_s9 = sadd.s32 4294967295, %s4557_s30   ;;  %s3963_s10 = sadd.s32 4294967294, %s4557_s30   ;;  %s4557_s30 = sphi %s4621_s30, %s6218_s30   ;;  %s4553_s29 = sphi %s4619_s29, %s6217_s29   ;;  %s4549_s28 = sphi %s4617_s28, %s6216_s28   ;;  %s4545_s27 = sphi %s4615_s27, %s6215_s27  }
   0x4   : > { %s4640_s11 = sadd.s32 1, %s4557_s30   ;;  %s201_s12 = sadd.s32 1, %s4553_s29 }
   0x5   : > { %s198_s13 = ssub.s32 %s4557_s30, %s4640_s11  ;;  %p211_p0 = scmp.ne.s32.totalorder %s4553_s29, %s4549_s28 }
   0x6   : > { %p199_p1 = scmp.eq.s32.totalorder %s198_s13, 0  ;;  %p212_p2 = scmp.eq.s32.totalorder %s4636_s9, 1 }
   0x7   : > { %p217_p3 = scmp.ne.s32.totalorder %s4549_s28, %s4545_s27  ;;  %p218_p4 = scmp.eq.s32.totalorder %s3963_s10, 1 }
   0x8   : > { %s4651_s14 = scalar_select %p199_p1, %s4553_s29, %s201_s12  }
   0x9   : > { %p4653_p5 = por %p212_p2, %p211_p0  ;;  %p4657_p6 = por %p218_p4, %p217_p3 }
   0xa   : > { %p3966_p7 = scmp.ge.s32.totalorder %s4557_s30, 1  ;;  %p265_p8 = scmp.lt.s32.totalorder %s4557_s30, 3 }
   0xc   : > { %p266_p9 = pnand %p3966_p7, %p265_p8 }
   0xe   : > { %269 = sbr.rel (%p266_p9) target bundleno = 1433 (0x599), region = 52 }
  0x15   : > { %p299_p10 = scmp.lt.s32.totalorder %s4636_s9, 1  ;;  %v6185_v0 = vmov 0.0   ;;  %s4560_s22 = smov 15   ;;  %v327_v3 = vlaneseq  ;;  %v1549_v4 = vld [vmem:[%s6171_s3 + $0x8] sm:$0xff]  ;;  %v1548_v5 = vld [vmem:[%s6171_s3] sm:$0xff]  ;;  %v4568_v6 = vmov 0  }
  0x16   : > { %697 = vmatprep.mubr.f32.mxu0 %v6185_v0  ;;  %458 = vmatprep.mubr.f32.mxu1 %v6185_v0  ;;  %s4561_s23 = smov 1   ;;  %s6183_s24 = smov 127   ;;  %v1550_v7 = vld [vmem:[%s6171_s3 + $0x10] sm:$0xff]  ;;  %v1551_v8 = vld [vmem:[%s6171_s3 + $0x18] sm:$0xff]  ;;  %v3972_v13 = vld [vmem:[%s6168_s0 + $0x6] sm:$0x3] }
  0x17   : > { %s300_s17 = scalar_select %p299_p10, %s4636_s9, 1  ;;  %4493 = vset.pattern.permute.xlu1 %v4568_v6  ;;  %4492 = vset.pattern.permute.xlu0 %v4568_v6  ;;  %v334_v9 = vshrl.u32 %v327_v3, 7  ;;  %v4720_v10 = vand.u32 127, %v327_v3  ;;  %v3971_v14 = vld [vmem:[%s6168_s0 + $0x4] sm:$0x3]  ;;  %vm387_vm2 = vcmask 1043456  }
  0x18   : > { %s6179_s25 = smov 113   ;;  %s4564_s26 = smov 16   ;;  %vm374_vm3 = vcmask 31744   ;;  %v3993_v31 = vld [vmem:[%s6170_s2 + $0x40] sm:$0xff]  ;;  %v3994_v34 = vld [vmem:[%s6170_s2 + $0x48] sm:$0xff]  ;;  %v3995_v40 = vld [vmem:[%s6170_s2 + $0x50] sm:$0xff] }
  0x19   : > { %s4153_s18 = sshll.u32 %s300_s17, 3  ;;  %s6177_s10 = smov 112   ;;  %v4722_v11 = vsub.s32 0, %v334_v9  ;;  %v4724_v12 = vsub.s32 1, %v334_v9  ;;  %vm594_vm0 = vcmp.lt.s32.totalorder %v4720_v10, 15  ;;  %vm734_vm1 = vcmp.lt.s32.totalorder %v4720_v10, 1 }
  0x1a   : > { %s303_s21 = scalar_lea.vmem %s6169_s1, %s4153_s18  ;;  %s4566_s12 = smov 17   ;;  %v3970_v35 = vld [vmem:[%s6168_s0 + $0x2] sm:$0x3]  ;;  %vm353_vm4 = vcmp.lt.s32.totalorder %v4720_v10, 16  ;;  %v3973_v43 = vld [vmem:[%s6168_s0 + $0xa] sm:$0x3] }
  0x1b   : > { %v4670_v1 = vld [vmem:[%s303_s21] sm:$0xff]  ;;  %s6181_s13 = smov 111   ;;  %v4735_v17 = vrot.slane %v3972_v13, %v4724_v12  ;;  %v4738_v18 = vrot.slane %v3971_v14, %v4722_v11  ;;  %v4741_v19 = vrot.slane %v3971_v14, %v4724_v12  ;;  %v4744_v20 = vrot.slane %v3972_v13, %v4722_v11  ;;  %v3996_v48 = vld [vmem:[%s6170_s2 + $0x58] sm:$0xff]  ;;  %v3978_v57 = vld [vmem:[%s6170_s2 + $0x28] sm:$0xff]  ;;  %s6201_s17 = smov 113  }
  0x1c   : > { %590 = vrot.lane.b32.xlu0 %v4670_v1, %s4560_s22  ;;  %730 = vrot.lane.b32.xlu1 %v4670_v1, %s4561_s23  ;;  %v4678_v2 = vcombine.high %v4670_v1, %v4670_v1  ;;  %v4786_v38 = vrot.slane %v3970_v35, %v4722_v11  ;;  %v4789_v39 = vrot.slane %v3970_v35, %v4724_v12  ;;  %vm992_vm5 = vcmp.lt.s32.totalorder %v4720_v10, 127  ;;  %v3977_v49 = vld [vmem:[%s6170_s2 + $0x20] sm:$0xff]  ;;  %v4004_v3 = vld [vmem:[%s6170_s2 + $0x68] sm:$0xff]  ;;  %s6202_s18 = smov 112   ;;  %s6203_s19 = smov 111  }
  0x1d   : > { %v304_v50 = vld [vmem:[%s6168_s0] sm:$0x3]  ;;  %v4817_v51 = vrot.slane %v3973_v43, %v4724_v12  ;;  %vm329_vm6 = vcmp.lt.s32.totalorder %v4720_v10, 17  ;;  %v3980_v6 = vld [vmem:[%s6170_s2 + $0x38] sm:$0xff]  ;;  %vm1132_vm7 = vcmp.lt.s32.totalorder %v4720_v10, 113  ;;  %v4889_v9 = vrot.slane %v3973_v43, %v4722_v11  ;;  %s6204_s20 = smov 127  }
  0x1e   : > { %v4833_v55 = vrot.slane %v304_v50, %v4724_v12  ;;  %v4003_v56 = vld [vmem:[%s6170_s2 + $0x60] sm:$0xff]  ;;  %v4845_v60 = vrot.slane %v304_v50, %v4722_v11  ;;  %vm1272_vm8 = vcmp.lt.s32.totalorder %v4720_v10, 112  ;;  %vm1412_vm9 = vcmp.lt.s32.totalorder %v4720_v10, 111  ;;  %s296_s21 = sand.u32 1, %s4549_s28  }
  0x1f   : > { %v345_v13 = vld [vmem:[%s6170_s2] sm:$0xff] }
  0x20   : > { %592 = vrot.lane.b32.xlu0 %v4678_v2, %s4560_s22  ;;  %732 = vrot.lane.b32.xlu1 %v4678_v2, %s4561_s23  ;;  %v4146_v10 = vld [vmem:[%s6174_s6 + $0x40] sm:$0xff] }
  0x24   : > { %990 = vrot.lane.b32.xlu1 %v4678_v2, %s6183_s24  ;;  %988 = vrot.lane.b32.xlu0 %v4670_v1, %s6183_s24 }
  0x28   : > { %1130 = vrot.lane.b32.xlu1 %v4678_v2, %s6179_s25  ;;  %1128 = vrot.lane.b32.xlu0 %v4670_v1, %s6179_s25 }
  0x2c   : > { %351 = vrot.lane.b32.xlu1 %v4678_v2, %s4564_s26  ;;  %349 = vrot.lane.b32.xlu0 %v4670_v1, %s4564_s26 }
  0x30   : > { %1270 = vrot.lane.b32.xlu1 %v4678_v2, %s6177_s10  ;;  %1268 = vrot.lane.b32.xlu0 %v4670_v1, %s6177_s10  ;;  %s4154_s10 = sshll.u32 %s4636_s9, 8  ;;  %s3890_s9 = scalar_lea.sflag [#allocation3], %s296_s21 }
  0x34   : > { %325 = vrot.lane.b32.xlu1 %v4678_v2, %s4566_s12  ;;  %323 = vrot.lane.b32.xlu0 %v4670_v1, %s4566_s12 }
  0x38   : > { %1410 = vrot.lane.b32.xlu1 %v4678_v2, %s6181_s13  ;;  %1408 = vrot.lane.b32.xlu0 %v4670_v1, %s6181_s13 }
  0x3c   : > { %1559 = vperm.xlu1 %4493, %v1549_v4   ;;  %1554 = vperm.xlu0 %4492, %v1548_v5   ;;  %v3979_v4 = vld [vmem:[%s6170_s2 + $0x30] sm:$0xff] }
  0x40   : > { %1564 = vperm.xlu1 %4493, %v1550_v7   ;;  %1569 = vperm.xlu0 %4492, %v1551_v8   ;;  %v3974_v7 = vld [vmem:[%s6168_s0 + $0xc] sm:$0x3]  ;;  %v4006_v8 = vld [vmem:[%s6170_s2 + $0x78] sm:$0xff] }
  0x8e   : > { %v591_v15 = vpop.permute.xlu0 %590  ;;  %v731_v16 = vpop.permute.xlu1 %730 }
  0x92   : > { %v593_v21 = vpop.permute.xlu0 %592  ;;  %v733_v22 = vpop.permute.xlu1 %732 }
  0x93   : > { %v596_v23 = vsel %vm594_vm0, %v593_v21, %v591_v15  ;;  %v735_v24 = vsel %vm734_vm1, %v731_v16, %v733_v22  ;;  %v736_v25 = vsel %vm734_vm1, %v733_v22, %v731_v16  ;;  %v595_v26 = vsel %vm594_vm0, %v591_v15, %v593_v21  ;;  %v4013_v22 = vld [vmem:[%s6170_s2 + $0x80] sm:$0xff] }
  0x94   : > { %v749_v27 = vmul.f32 %v4735_v17, %v735_v24  ;;  %v609_v28 = vmul.f32 %v4741_v19, %v595_v26  ;;  %v608_v29 = vmul.f32 %v4738_v18, %v596_v23  ;;  %v748_v30 = vmul.f32 %v4744_v20, %v736_v25  ;;  %v346_v23 = vld [vmem:[%s6170_s2 + $0x8] sm:$0xff]  ;;  %v347_v26 = vld [vmem:[%s6170_s2 + $0x10] sm:$0xff] }
  0x95   : > { %v4900_v15 = vrot.slane %v3974_v7, %v4724_v12  ;;  %v4014_v25 = vld [vmem:[%s6170_s2 + $0x88] sm:$0xff] }
  0x96   : > { %3997 = vmatprep.subr.msk.mxu0 %vm387_vm2, %v609_v28  ;;  %v4762_v32 = vpop.permute.xlu1 %990  ;;  %v4764_v33 = vpop.permute.xlu0 %988  ;;  %v348_v28 = vld [vmem:[%s6170_s2 + $0x18] sm:$0xff] }
  0x97   : > { %3998 = vmatpush1.msk.msra.mxu0 %vm387_vm2, %v608_v29  ;;  %v994_v54 = vsel %vm992_vm5, %v4762_v32, %v4764_v33  ;;  %v993_v14 = vsel %vm992_vm5, %v4764_v33, %v4762_v32  ;;  %v3975_v29 = vld [vmem:[%s6168_s0 + $0xe] sm:$0x3] }
  0x98   : > { %3999 = vmatmul.mubr.msk.f32.vlgmr.msra.gmra.mrb[0].mxu0 %vm374_vm3, %v3993_v31  ;;  %4007 = vmatprep.subr.msk.mxu0 %vm387_vm2, %v749_v27  ;;  %v1007_v58 = vmul.f32 %v4817_v51, %v994_v54  ;;  %v1006_v21 = vmul.f32 %v4889_v9, %v993_v14  ;;  %v4015_v27 = vld [vmem:[%s6170_s2 + $0x90] sm:$0xff]  ;;  %v4951_v31 = vrot.slane %v3974_v7, %v4722_v11  ;;  %v4033_v54 = vld [vmem:[%s6170_s2 + $0xc0] sm:$0xff] }
  0x99   : > { %4008 = vmatpush1.msk.msra.mxu0 %vm387_vm2, %v748_v30  ;;  %703 = vmatprep.mubr.f32.mxu0 %v6185_v0  ;;  %v4016_v30 = vld [vmem:[%s6170_s2 + $0x98] sm:$0xff]  ;;  %v4959_v33 = vrot.slane %v3975_v29, %v4724_v12 }
  0x9a   : > { %4017 = vmatprep.subr.msk.mxu0 %vm387_vm2, %v4678_v2  ;;  %v4779_v36 = vpop.permute.xlu1 %1130  ;;  %v4781_v37 = vpop.permute.xlu0 %1128 }
  0x9b   : > { %v1134_v16 = vsel %vm1132_vm7, %v4779_v36, %v4781_v37  ;;  %v1133_v32 = vsel %vm1132_vm7, %v4781_v37, %v4779_v36  ;;  %6197 = vst [vmem:[#allocation5_spill] sm:$0xff] %v4959_v33  ;;  %v4024_v37 = vld [vmem:[%s6170_s2 + $0xa8] sm:$0xff] }
  0x9c   : > { %4000 = vmatmul.mubr.msk.f32.gmra.mrb[2].mxu0 %vm374_vm3, %v3994_v34  ;;  %v1147_v24 = vmul.f32 %v4900_v15, %v1134_v16  ;;  %v1146_v35 = vmul.f32 %v4951_v31, %v1133_v32 }
  0x9d   : > { %709 = vmatprep.mubr.f32.mxu0 %v6185_v0 }
  0x9e   : > { %v352_v41 = vpop.permute.xlu1 %351  ;;  %v350_v42 = vpop.permute.xlu0 %349 }
  0x9f   : > { %v355_v44 = vsel %vm353_vm4, %v352_v41, %v350_v42  ;;  %v354_v45 = vsel %vm353_vm4, %v350_v42, %v352_v41  ;;  %v4025_v41 = vld [vmem:[%s6170_s2 + $0xb0] sm:$0xff] }
  0xa0   : > { %4001 = vmatmul.mubr.msk.f32.gmra.mrb[4].mxu0 %vm374_vm3, %v3995_v40  ;;  %v368_v46 = vmul.f32 %v4789_v39, %v354_v45  ;;  %v367_v47 = vmul.f32 %v4786_v38, %v355_v44  ;;  %v4023_v40 = vld [vmem:[%s6170_s2 + $0xa0] sm:$0xff]  ;;  %v3976_v42 = vld [vmem:[%s6168_s0 + $0x10] sm:$0x3]  ;;  %v4026_v45 = vld [vmem:[%s6170_s2 + $0xb8] sm:$0xff] }
  0xa1   : > { %715 = vmatprep.mubr.f32.mxu0 %v6185_v0 }
  0xa2   : > { %3981 = vmatprep.subr.msk.mxu1 %vm387_vm2, %v368_v46  ;;  %v4820_v52 = vpop.permute.xlu1 %1270  ;;  %v4822_v53 = vpop.permute.xlu0 %1268  ;;  %v4994_v46 = vrot.slane %v3975_v29, %v4722_v11 }
  0xa3   : > { %3982 = vmatpush1.msk.msra.mxu1 %vm387_vm2, %v367_v47  ;;  %v1274_v34 = vsel %vm1272_vm8, %v4820_v52, %v4822_v53  ;;  %v1273_v47 = vsel %vm1272_vm8, %v4822_v53, %v4820_v52  ;;  %v4035_v52 = vld [vmem:[%s6170_s2 + $0xd0] sm:$0xff]  ;;  %v4036_v53 = vld [vmem:[%s6170_s2 + $0xd8] sm:$0xff] }
  0xa4   : > { %4002 = vmatmul.mubr.msk.f32.gmra.mrb[6].mxu0 %vm374_vm3, %v3996_v48  ;;  %3983 = vmatmul.mubr.msk.f32.vlgmr.msra.gmra.mrb[0].mxu1 %vm374_vm3, %v3977_v49  ;;  %v1287_v36 = vmul.f32 %v4959_v33, %v1274_v34  ;;  %6198 = vst [vmem:[#allocation6_spill] sm:$0xff] %v4994_v46  ;;  %v5001_v48 = vrot.slane %v3976_v42, %v4724_v12  ;;  %v4034_v12 = vld [vmem:[%s6170_s2 + $0xc8] sm:$0xff] }
  0xa5   : > { %837 = vmatprep.mubr.f32.mxu0 %v6185_v0  ;;  %464 = vmatprep.mubr.f32.mxu1 %v6185_v0  ;;  %v1286_v50 = vmul.f32 %v4994_v46, %v1273_v47 }
  0xa6   : > { %v326_v59 = vpop.permute.xlu1 %325  ;;  %v324_v61 = vpop.permute.xlu0 %323  ;;  %6199 = vst [vmem:[#allocation7_spill] sm:$0xff] %v5001_v48 }
  0xa7   : > { %v330_v62 = vsel %vm329_vm6, %v324_v61, %v326_v59  ;;  %v331_v63 = vsel %vm329_vm6, %v326_v59, %v324_v61  ;;  %v4043_v61 = vld [vmem:[%s6170_s2 + $0xe0] sm:$0xff] }
  0xa8   : > { %4009 = vmatmul.mubr.msk.f32.vlgmr.msra.gmra.mrb[0].mxu0 %vm374_vm3, %v4003_v56  ;;  %3984 = vmatmul.mubr.msk.f32.gmra.mrb[2].mxu1 %vm374_vm3, %v3978_v57  ;;  %v344_v2 = vmul.f32 %v4833_v55, %v330_v62  ;;  %v343_v5 = vmul.f32 %v4845_v60, %v331_v63  ;;  %v5030_v57 = vrot.slane %v3976_v42, %v4722_v11  ;;  %v4044_v11 = vld [vmem:[%s6170_s2 + $0xe8] sm:$0xff]  ;;  %v4045_v62 = vld [vmem:[%s6170_s2 + $0xf0] sm:$0xff]  ;;  %v4046_v63 = vld [vmem:[%s6170_s2 + $0xf8] sm:$0xff] }
  0xa9   : > { %843 = vmatprep.mubr.f32.mxu0 %v6185_v0  ;;  %4018 = vmatpush1.msk.msra.mxu0 %vm387_vm2, %v4670_v1  ;;  %v4005_v1 = vld [vmem:[%s6170_s2 + $0x70] sm:$0xff] }
  0xaa   : > { %4027 = vmatprep.subr.msk.mxu0 %vm387_vm2, %v1007_v58  ;;  %470 = vmatprep.mubr.f32.mxu1 %v6185_v0  ;;  %v1411_v43 = vpop.permute.xlu1 %1410  ;;  %v1409_v44 = vpop.permute.xlu0 %1408  ;;  %6200 = vst [vmem:[#allocation8_spill] sm:$0xff] %v5030_v57 }
  0xab   : > { %3987 = vmatprep.subr.msk.mxu1 %vm387_vm2, %v344_v2  ;;  %v1414_v49 = vsel %vm1412_vm9, %v1411_v43, %v1409_v44  ;;  %v1413_v58 = vsel %vm1412_vm9, %v1409_v44, %v1411_v43  ;;  %v4053_v2 = vld [vmem:[%s6170_s2 + $0x100] sm:$0xff] }
  0xac   : > { %4010 = vmatmul.mubr.msk.f32.gmra.mrb[2].mxu0 %vm374_vm3, %v4004_v3  ;;  %3985 = vmatmul.mubr.msk.f32.gmra.mrb[4].mxu1 %vm374_vm3, %v3979_v4  ;;  %v1427_v56 = vmul.f32 %v5001_v48, %v1414_v49  ;;  %v1426_v59 = vmul.f32 %v5030_v57, %v1413_v58  ;;  %v4054_v3 = vld [vmem:[%s6170_s2 + $0x108] sm:$0xff]  ;;  %v4055_v4 = vld [vmem:[%s6170_s2 + $0x110] sm:$0xff] }
  0xad   : > { %849 = vmatprep.mubr.f32.mxu0 %v6185_v0  ;;  %476 = vmatprep.mubr.f32.mxu1 %v6185_v0 }
  0xae   : > { %3988 = vmatpush1.msk.msra.mxu1 %vm387_vm2, %v343_v5  ;;  %v4056_v5 = vld [vmem:[%s6170_s2 + $0x118] sm:$0xff] }
  0xb0   : > { %4011 = vmatmul.mubr.msk.f32.gmra.mrb[4].mxu0 %vm374_vm3, %v4005_v1  ;;  %3986 = vmatmul.mubr.msk.f32.gmra.mrb[6].mxu1 %vm374_vm3, %v3980_v6 }
  0xb1   : > { %855 = vmatprep.mubr.f32.mxu0 %v6185_v0  ;;  %565 = vmatprep.mubr.f32.mxu1 %v6185_v0 }
  0xb4   : > { %4012 = vmatmul.mubr.msk.f32.gmra.mrb[6].mxu0 %vm374_vm3, %v4006_v8  ;;  %3989 = vmatmul.mubr.msk.f32.vlgmr.msra.gmra.mrb[0].mxu1 %vm374_vm3, %v345_v13 }
  0xb5   : > { %955 = vmatprep.mubr.f32.mxu0 %v6185_v0  ;;  %571 = vmatprep.mubr.f32.mxu1 %v6185_v0 }
  0xb8   : > { %4019 = vmatmul.mubr.msk.f32.vlgmr.msra.gmra.mrb[0].mxu0 %vm374_vm3, %v4013_v22  ;;  %3990 = vmatmul.mubr.msk.f32.gmra.mrb[2].mxu1 %vm374_vm3, %v346_v23 }
  0xb9   : > { %961 = vmatprep.mubr.f32.mxu0 %v6185_v0  ;;  %4028 = vmatpush1.msk.msra.mxu0 %vm387_vm2, %v1006_v21 }
  0xba   : > { %4037 = vmatprep.subr.msk.mxu0 %vm387_vm2, %v1147_v24  ;;  %577 = vmatprep.mubr.f32.mxu1 %v6185_v0 }
  0xbb   : > { %v1555_v23 = vpop.permute.xlu0 %1554 }
  0xbc   : > { %4020 = vmatmul.mubr.msk.f32.gmra.mrb[2].mxu0 %vm374_vm3, %v4014_v25  ;;  %3991 = vmatmul.mubr.msk.f32.gmra.mrb[4].mxu1 %vm374_vm3, %v347_v26 }
  0xbd   : > { %967 = vmatprep.mubr.f32.mxu0 %v6185_v0  ;;  %583 = vmatprep.mubr.f32.mxu1 %v6185_v0 }
  0xc0   : > { %4021 = vmatmul.mubr.msk.f32.gmra.mrb[4].mxu0 %vm374_vm3, %v4015_v27  ;;  %3992 = vmatmul.mubr.msk.f32.gmra.mrb[6].mxu1 %vm374_vm3, %v348_v28  ;;  %v1560_v28 = vpop.permute.xlu1 %1559 }
  0xc1   : > { %973 = vmatprep.mubr.f32.mxu0 %v6185_v0  ;;  %1754 = vmatprep.mubr.f32.mxu1 %v6185_v0 }
  0xc4   : > { %4022 = vmatmul.mubr.msk.f32.gmra.mrb[6].mxu0 %vm374_vm3, %v4016_v30  ;;  %v1565_v49 = vpop.permute.xlu1 %1564 }
  0xc5   : > { %1095 = vmatprep.mubr.f32.mxu0 %v6185_v0 }
  0xc8   : > { %4029 = vmatmul.mubr.msk.f32.vlgmr.msra.gmra.mrb[0].mxu0 %vm374_vm3, %v4023_v40 }
  0xc9   : > { %1101 = vmatprep.mubr.f32.mxu0 %v6185_v0  ;;  %4038 = vmatpush1.msk.msra.mxu0 %vm387_vm2, %v1146_v35 }
  0xca   : > { %4047 = vmatprep.subr.msk.mxu0 %vm387_vm2, %v1287_v36 }
  0xcc   : > { %4030 = vmatmul.mubr.msk.f32.gmra.mrb[2].mxu0 %vm374_vm3, %v4024_v37 }
  0xcd   : > { %1107 = vmatprep.mubr.f32.mxu0 %v6185_v0 }
  0xd0   : > { %4031 = vmatmul.mubr.msk.f32.gmra.mrb[4].mxu0 %vm374_vm3, %v4025_v41 }
  0xd1   : > { %1113 = vmatprep.mubr.f32.mxu0 %v6185_v0 }
  0xd4   : > { %4032 = vmatmul.mubr.msk.f32.gmra.mrb[6].mxu0 %vm374_vm3, %v4026_v45 }
  0xd5   : > { %1235 = vmatprep.mubr.f32.mxu0 %v6185_v0 }
  0xd8   : > { %4039 = vmatmul.mubr.msk.f32.vlgmr.msra.gmra.mrb[0].mxu0 %vm374_vm3, %v4033_v54 }
  0xd9   : > { %1241 = vmatprep.mubr.f32.mxu0 %v6185_v0  ;;  %4048 = vmatpush1.msk.msra.mxu0 %vm387_vm2, %v1286_v50 }
  0xda   : > { %4057 = vmatprep.subr.msk.mxu0 %vm387_vm2, %v1427_v56 }
  0xdc   : > { %4040 = vmatmul.mubr.msk.f32.gmra.mrb[2].mxu0 %vm374_vm3, %v4034_v12 }
  0xdd   : > { %1247 = vmatprep.mubr.f32.mxu0 %v6185_v0 }
  0xe0   : > { %4041 = vmatmul.mubr.msk.f32.gmra.mrb[4].mxu0 %vm374_vm3, %v4035_v52 }
  0xe1   : > { %1253 = vmatprep.mubr.f32.mxu0 %v6185_v0 }
  0xe4   : > { %4042 = vmatmul.mubr.msk.f32.gmra.mrb[6].mxu0 %vm374_vm3, %v4036_v53 }
  0xe5   : > { %1375 = vmatprep.mubr.f32.mxu0 %v6185_v0 }
  0xe8   : > { %4049 = vmatmul.mubr.msk.f32.vlgmr.msra.gmra.mrb[0].mxu0 %vm374_vm3, %v4043_v61 }
  0xe9   : > { %1381 = vmatprep.mubr.f32.mxu0 %v6185_v0  ;;  %4058 = vmatpush1.msk.msra.mxu0 %vm387_vm2, %v1426_v59 }
  0xec   : > { %4050 = vmatmul.mubr.msk.f32.gmra.mrb[2].mxu0 %vm374_vm3, %v4044_v11 }
  0xed   : > { %1387 = vmatprep.mubr.f32.mxu0 %v6185_v0 }
  0xf0   : > { %4051 = vmatmul.mubr.msk.f32.gmra.mrb[4].mxu0 %vm374_vm3, %v4045_v62  ;;  %v1570_v62 = vpop.permute.xlu0 %1569 }
  0xf1   : > { %1393 = vmatprep.mubr.f32.mxu0 %v6185_v0 }
  0xf4   : > { %4052 = vmatmul.mubr.msk.f32.gmra.mrb[6].mxu0 %vm374_vm3, %v4046_v63 }
  0xf5   : > { %1515 = vmatprep.mubr.f32.mxu0 %v6185_v0 }
  0xf8   : > { %4059 = vmatmul.mubr.msk.f32.vlgmr.msra.gmra.mrb[0].mxu0 %vm374_vm3, %v4053_v2 }
  0xf9   : > { %1521 = vmatprep.mubr.f32.mxu0 %v6185_v0 }
  0xfc   : > { %4060 = vmatmul.mubr.msk.f32.gmra.mrb[2].mxu0 %vm374_vm3, %v4054_v3 }
  0xfd   : > { %1527 = vmatprep.mubr.f32.mxu0 %v6185_v0 }
 0x100   : > { %4061 = vmatmul.mubr.msk.f32.gmra.mrb[4].mxu0 %vm374_vm3, %v4055_v4 }
 0x101   : > { %1533 = vmatprep.mubr.f32.mxu0 %v6185_v0 }
 0x104   : > { %4062 = vmatmul.mubr.msk.f32.gmra.mrb[6].mxu0 %vm374_vm3, %v4056_v5 }
 0x105   : > { %3060 = vmatprep.mubr.f32.mxu0 %v6185_v0 }
 0x187   : > { %v567_v1 = vpop.f32.mrb[0].mxu1 }
 0x188   : > { %v569_v6 = vpop.f32.mrb[1].mxu1 }
 0x18b   : > { %v573_v7 = vpop.f32.mrb[2].mxu1 }
 0x18c   : > { %v575_v8 = vpop.f32.mrb[3].mxu1 }
 0x18f   : > { %v579_v13 = vpop.f32.mrb[4].mxu1 }
 0x190   : > { %v581_v14 = vpop.f32.mrb[5].mxu1 }
 0x193   : > { %v585_v16 = vpop.f32.mrb[6].mxu1 }
 0x194   : > { %v587_v21 = vpop.f32.mrb[7].mxu1 }
 0x1cb   : > { %v1517_v22 = vpop.f32.mrb[0].mxu0 }
 0x1cc   : > { %v4299_v24 = vadd.f32 %v1517_v22, %v567_v1  ;;  %v1519_v25 = vpop.f32.mrb[1].mxu0 }
 0x1cd   : > { %v4300_v26 = vadd.f32 %v1519_v25, %v569_v6 }
 0x1ce   : > { %v1572_v27 = vadd.f32 %v4299_v24, %v1555_v23 }
 0x1cf   : > { %v1573_v29 = vadd.f32 %v4300_v26, %v1555_v23  ;;  %v1523_v30 = vpop.f32.mrb[2].mxu0 }
 0x1d0   : > { %vm1580_vm10 = vcmp.ge.f32.partialorder %v1572_v27, 0.0  ;;  %v1588_v32 = vmul.f32 0.2, %v1572_v27  ;;  %v4301_v34 = vadd.f32 %v1523_v30, %v573_v7  ;;  %v1525_v35 = vpop.f32.mrb[3].mxu0 }
 0x1d1   : > { %v4302_v40 = vadd.f32 %v1525_v35, %v575_v8  ;;  %v1589_v36 = vmul.f32 0.2, %v1573_v29  ;;  %vm1581_vm11 = vcmp.ge.f32.partialorder %v1573_v29, 0.0  ;;  %v2870_v35 = vld [vmem:[%s6173_s5] sm:$0xff] }
 0x1d2   : > { %v5078_v37 = vsel %vm1580_vm10, %v1572_v27, %v1588_v32  ;;  %v1574_v41 = vadd.f32 %v4301_v34, %v1560_v28  ;;  %vm1677_vm10 = vcmask 261120  }
 0x1d3   : > { %v1575_v42 = vadd.f32 %v4302_v40, %v1560_v28  ;;  %v1529_v43 = vpop.f32.mrb[4].mxu0  ;;  %1640 = vrot.lane.b32.xlu1 %v5078_v37, %s4564_s26  ;;  %v5082_v54 = vsel %vm1581_vm11, %v1573_v29, %v1589_v36 }
 0x1d4   : > { %vm1582_vm12 = vcmp.ge.f32.partialorder %v1574_v41, 0.0  ;;  %v1590_v44 = vmul.f32 0.2, %v1574_v41  ;;  %v4303_v45 = vadd.f32 %v1529_v43, %v579_v13  ;;  %v1531_v47 = vpop.f32.mrb[5].mxu0 }
 0x1d5   : > { %v4304_v50 = vadd.f32 %v1531_v47, %v581_v14  ;;  %v1591_v12 = vmul.f32 0.2, %v1575_v42  ;;  %vm1583_vm13 = vcmp.ge.f32.partialorder %v1575_v42, 0.0  ;;  %v2871_v47 = vld [vmem:[%s6173_s5 + $0x8] sm:$0xff] }
 0x1d6   : > { %v5084_v56 = vsel %vm1582_vm12, %v1574_v41, %v1590_v44  ;;  %v1576_v52 = vadd.f32 %v4303_v45, %v1565_v49  ;;  %v2872_v45 = vld [vmem:[%s6173_s5 + $0x10] sm:$0xff] }
 0x1d7   : > { %v1577_v53 = vadd.f32 %v4304_v50, %v1565_v49  ;;  %1642 = vrot.lane.b32.xlu0 %v5084_v56, %s4564_s26  ;;  %v1535_v58 = vpop.f32.mrb[6].mxu0  ;;  %1648 = vrot.lane.b32.xlu1 %v5082_v54, %s4564_s26  ;;  %v5090_v2 = vsel %vm1583_vm13, %v1575_v42, %v1591_v12 }
 0x1d8   : > { %vm1584_vm14 = vcmp.ge.f32.partialorder %v1576_v52, 0.0  ;;  %v1592_v59 = vmul.f32 0.2, %v1576_v52  ;;  %v4305_v61 = vadd.f32 %v1535_v58, %v585_v16  ;;  %v1537_v11 = vpop.f32.mrb[7].mxu0 }
 0x1d9   : > { %v4306_v63 = vadd.f32 %v1537_v11, %v587_v21  ;;  %v1593_v4 = vmul.f32 0.2, %v1577_v53  ;;  %vm1585_vm15 = vcmp.ge.f32.partialorder %v1577_v53, 0.0  ;;  %v2873_v11 = vld [vmem:[%s6173_s5 + $0x18] sm:$0xff] }
 0x1da   : > { %v5092_v3 = vsel %vm1584_vm14, %v1576_v52, %v1592_v59  ;;  %v1578_v5 = vadd.f32 %v4305_v61, %v1570_v62 }
 0x1db   : > { %v1579_v1 = vadd.f32 %v4306_v63, %v1570_v62  ;;  %1650 = vrot.lane.b32.xlu0 %v5090_v2, %s4564_s26  ;;  %1644 = vrot.lane.b32.xlu1 %v5092_v3, %s4564_s26  ;;  %v5098_v7 = vsel %vm1585_vm15, %v1577_v53, %v1593_v4 }
 0x1dc   : > { %vm1586_vm2 = vcmp.ge.f32.partialorder %v1578_v5, 0.0  ;;  %v1594_v6 = vmul.f32 0.2, %v1578_v5 }
 0x1dd   : > { %v1595_v13 = vmul.f32 0.2, %v1579_v1  ;;  %vm1587_vm3 = vcmp.ge.f32.partialorder %v1579_v1, 0.0 }
 0x1de   : > { %v5100_v8 = vsel %vm1586_vm2, %v1578_v5, %v1594_v6 }
 0x1df   : > { %1652 = vrot.lane.b32.xlu1 %v5098_v7, %s4564_s26  ;;  %1646 = vrot.lane.b32.xlu0 %v5100_v8, %s4564_s26  ;;  %v5106_v14 = vsel %vm1587_vm3, %v1579_v1, %v1595_v13  ;;  %v4063_v13 = vld [vmem:[%s6172_s4 + $0x20] sm:$0xff] }
 0x1e3   : > { %1604 = vrot.lane.b32.xlu1 %v5078_v37, %s4566_s12  ;;  %1654 = vrot.lane.b32.xlu0 %v5106_v14, %s4564_s26 }
 0x1e7   : > { %1612 = vrot.lane.b32.xlu1 %v5082_v54, %s4566_s12  ;;  %1606 = vrot.lane.b32.xlu0 %v5084_v56, %s4566_s12 }
 0x1eb   : > { %1608 = vrot.lane.b32.xlu1 %v5092_v3, %s4566_s12  ;;  %1614 = vrot.lane.b32.xlu0 %v5090_v2, %s4566_s12 }
 0x1ef   : > { %1616 = vrot.lane.b32.xlu1 %v5098_v7, %s4566_s12  ;;  %1610 = vrot.lane.b32.xlu0 %v5100_v8, %s4566_s12 }
 0x1f3   : > { %1880 = vrot.lane.b32.xlu1 %v5078_v37, %s4560_s22  ;;  %1618 = vrot.lane.b32.xlu0 %v5106_v14, %s4566_s12 }
 0x1f7   : > { %1888 = vrot.lane.b32.xlu1 %v5082_v54, %s4560_s22  ;;  %1882 = vrot.lane.b32.xlu0 %v5084_v56, %s4560_s22 }
 0x1fb   : > { %1884 = vrot.lane.b32.xlu1 %v5092_v3, %s4560_s22  ;;  %1890 = vrot.lane.b32.xlu0 %v5090_v2, %s4560_s22 }
 0x1ff   : > { %1892 = vrot.lane.b32.xlu1 %v5098_v7, %s4560_s22  ;;  %1886 = vrot.lane.b32.xlu0 %v5100_v8, %s4560_s22 }
 0x203   : > { %2026 = vrot.lane.b32.xlu1 %v5078_v37, %s4561_s23  ;;  %1894 = vrot.lane.b32.xlu0 %v5106_v14, %s4560_s22 }
 0x207   : > { %2034 = vrot.lane.b32.xlu1 %v5082_v54, %s4561_s23  ;;  %2028 = vrot.lane.b32.xlu0 %v5084_v56, %s4561_s23 }
 0x20b   : > { %2030 = vrot.lane.b32.xlu1 %v5092_v3, %s4561_s23  ;;  %2036 = vrot.lane.b32.xlu0 %v5090_v2, %s4561_s23 }
 0x20f   : > { %2038 = vrot.lane.b32.xlu1 %v5098_v7, %s4561_s23  ;;  %2032 = vrot.lane.b32.xlu0 %v5100_v8, %s4561_s23 }
 0x213   : > { %2286 = vrot.lane.b32.xlu1 %v5078_v37, %s6183_s24  ;;  %2040 = vrot.lane.b32.xlu0 %v5106_v14, %s4561_s23 }
 0x217   : > { %2294 = vrot.lane.b32.xlu1 %v5082_v54, %s6183_s24  ;;  %2288 = vrot.lane.b32.xlu0 %v5084_v56, %s6183_s24 }
 0x21b   : > { %2290 = vrot.lane.b32.xlu1 %v5092_v3, %s6183_s24  ;;  %2296 = vrot.lane.b32.xlu0 %v5090_v2, %s6183_s24 }
 0x21f   : > { %2298 = vrot.lane.b32.xlu1 %v5098_v7, %s6183_s24  ;;  %2292 = vrot.lane.b32.xlu0 %v5100_v8, %s6183_s24 }
 0x223   : > { %2432 = vrot.lane.b32.xlu1 %v5078_v37, %s6201_s17  ;;  %2300 = vrot.lane.b32.xlu0 %v5106_v14, %s6183_s24  ;;  %s3967_s24 = sshll.u32 %s296_s21, 4 }
 0x224   : > { %s298_s25 = scalar_lea.vmem [#allocation2], %s3967_s24 }
 0x225   : > { %s3904_s13 = sshll.u32 %s298_s25, 4  ;;  %s6128_s13 = int_to_ptr.vmem [resolvable:$true] %s3904_s13 }
 0x227   : > { %2440 = vrot.lane.b32.xlu1 %v5082_v54, %s6201_s17  ;;  %2434 = vrot.lane.b32.xlu0 %v5084_v56, %s6201_s17 }
 0x22b   : > { %2436 = vrot.lane.b32.xlu1 %v5092_v3, %s6201_s17  ;;  %2442 = vrot.lane.b32.xlu0 %v5090_v2, %s6201_s17 }
 0x22f   : > { %2444 = vrot.lane.b32.xlu1 %v5098_v7, %s6201_s17  ;;  %2438 = vrot.lane.b32.xlu0 %v5100_v8, %s6201_s17 }
 0x233   : > { %2578 = vrot.lane.b32.xlu1 %v5078_v37, %s6202_s18  ;;  %2446 = vrot.lane.b32.xlu0 %v5106_v14, %s6201_s17 }
 0x237   : > { %2586 = vrot.lane.b32.xlu1 %v5082_v54, %s6202_s18  ;;  %2580 = vrot.lane.b32.xlu0 %v5084_v56, %s6202_s18 }
 0x23b   : > { %2582 = vrot.lane.b32.xlu1 %v5092_v3, %s6202_s18  ;;  %2588 = vrot.lane.b32.xlu0 %v5090_v2, %s6202_s18 }
 0x23f   : > { %2590 = vrot.lane.b32.xlu1 %v5098_v7, %s6202_s18  ;;  %2584 = vrot.lane.b32.xlu0 %v5100_v8, %s6202_s18 }
 0x243   : > { %2724 = vrot.lane.b32.xlu1 %v5078_v37, %s6203_s19  ;;  %2592 = vrot.lane.b32.xlu0 %v5106_v14, %s6202_s18 }
 0x245   : > { %v1641_v16 = vpop.permute.xlu1 %1640 }
 0x247   : > { %2732 = vrot.lane.b32.xlu1 %v5082_v54, %s6203_s19  ;;  %2726 = vrot.lane.b32.xlu0 %v5084_v56, %s6203_s19 }
 0x249   : > { %v1649_v21 = vpop.permute.xlu1 %1648  ;;  %v1643_v22 = vpop.permute.xlu0 %1642 }
 0x24a   : > { %v1660_v23 = vsel %vm353_vm4, %v1649_v21, %v1641_v16  ;;  %v1656_v24 = vsel %vm353_vm4, %v1641_v16, %v1649_v21 }
 0x24b   : > { %2728 = vrot.lane.b32.xlu1 %v5092_v3, %s6203_s19  ;;  %2734 = vrot.lane.b32.xlu0 %v5090_v2, %s6203_s19  ;;  %v1664_v27 = vmul.f32 %v1660_v23, %v4786_v38  ;;  %v1665_v30 = vmul.f32 %v1656_v24, %v4789_v39 }
 0x24d   : > { %v1645_v25 = vpop.permute.xlu1 %1644  ;;  %v1651_v26 = vpop.permute.xlu0 %1650 }
 0x24e   : > { %v1657_v28 = vsel %vm353_vm4, %v1643_v22, %v1651_v26  ;;  %v1661_v29 = vsel %vm353_vm4, %v1651_v26, %v1643_v22 }
 0x24f   : > { %v1666_v32 = vmul.f32 %v1661_v29, %v4786_v38  ;;  %v1667_v34 = vmul.f32 %v1657_v28, %v4789_v39  ;;  %2736 = vrot.lane.b32.xlu1 %v5098_v7, %s6203_s19  ;;  %2730 = vrot.lane.b32.xlu0 %v5100_v8, %s6203_s19  ;;  %v4064_v28 = vld [vmem:[%s6172_s4 + $0x28] sm:$0xff] }
 0x251   : > { %v4157_v40 = vpack.c.bf16 %v1666_v32, %v1664_v27  ;;  %v1653_v36 = vpop.permute.xlu1 %1652  ;;  %v1647_v41 = vpop.permute.xlu0 %1646  ;;  %v4155_v42 = vpack.c.bf16 %v1667_v34, %v1665_v30 }
 0x252   : > { %v1662_v43 = vsel %vm353_vm4, %v1653_v36, %v1645_v25  ;;  %v1658_v44 = vsel %vm353_vm4, %v1645_v25, %v1653_v36  ;;  %v4065_v36 = vld [vmem:[%s6172_s4 + $0x30] sm:$0xff] }
 0x253   : > { %2876 = vperm.xlu1 %4493, %v2870_v35   ;;  %2738 = vrot.lane.b32.xlu0 %v5106_v14, %s6203_s19  ;;  %v1668_v12 = vmul.f32 %v1662_v43, %v4786_v38  ;;  %v1669_v58 = vmul.f32 %v1658_v44, %v4789_v39 }
 0x254   : > { %4156 = vmatprep.subr.bf16.mxu1 %v4155_v42 }
 0x255   : > { %4158 = vmatpush1.bf16.msra.mxu1 %v4157_v40  ;;  %v1605_v49 = vpop.permute.xlu1 %1604  ;;  %v1655_v50 = vpop.permute.xlu0 %1654 }
 0x256   : > { %v1659_v52 = vsel %vm353_vm4, %v1647_v41, %v1655_v50  ;;  %v1663_v53 = vsel %vm353_vm4, %v1655_v50, %v1647_v41 }
 0x257   : > { %v1670_v59 = vmul.f32 %v1663_v53, %v4786_v38  ;;  %v1671_v61 = vmul.f32 %v1659_v52, %v4789_v39  ;;  %2886 = vperm.xlu1 %4493, %v2872_v45   ;;  %2881 = vperm.xlu0 %4492, %v2871_v47  }
 0x259   : > { %v4161_v62 = vpack.c.bf16 %v1670_v59, %v1668_v12  ;;  %v1613_v63 = vpop.permute.xlu1 %1612  ;;  %v1607_v4 = vpop.permute.xlu0 %1606  ;;  %v4159_v5 = vpack.c.bf16 %v1671_v61, %v1669_v58  ;;  %v4066_v12 = vld [vmem:[%s6172_s4 + $0x38] sm:$0xff] }
 0x25a   : > { %v1620_v1 = vsel %vm329_vm6, %v1605_v49, %v1613_v63  ;;  %v1624_v6 = vsel %vm329_vm6, %v1613_v63, %v1605_v49 }
 0x25b   : > { %2891 = vperm.xlu0 %4492, %v2873_v11   ;;  %4160 = vmatprep.subr.bf16.mxu1 %v4159_v5  ;;  %v1628_v24 = vmul.f32 %v1624_v6, %v4845_v60  ;;  %v1629_v25 = vmul.f32 %v1620_v1, %v4833_v55 }
 0x25c   : > { %4162 = vmatpush1.bf16.msra.mxu1 %v4161_v62  ;;  %v1636_v62 = vld [vmem:[%s6172_s4] sm:$0xff] }
 0x25d   : > { %v1609_v16 = vpop.permute.xlu1 %1608  ;;  %v1615_v21 = vpop.permute.xlu0 %1614 }
 0x25e   : > { %v1621_v22 = vsel %vm329_vm6, %v1607_v4, %v1615_v21  ;;  %v1625_v23 = vsel %vm329_vm6, %v1615_v21, %v1607_v4 }
 0x25f   : > { %v1630_v26 = vmul.f32 %v1625_v23, %v4845_v60  ;;  %v1631_v27 = vmul.f32 %v1621_v22, %v4833_v55  ;;  %4067 = vmatmul.mubr.msk.f32.vlgmr.msra.gmra.mrb[8].mxu1 %vm1677_vm10, %v4063_v13  ;;  %v1637_v22 = vld [vmem:[%s6172_s4 + $0x8] sm:$0xff] }
 0x260   : > { %1760 = vmatprep.mubr.f32.mxu1 %v6185_v0 }
 0x261   : > { %v4165_v29 = vpack.c.bf16 %v1630_v26, %v1628_v24  ;;  %v1617_v30 = vpop.permute.xlu1 %1616  ;;  %v1611_v32 = vpop.permute.xlu0 %1610  ;;  %v4163_v34 = vpack.c.bf16 %v1631_v27, %v1629_v25 }
 0x262   : > { %v1622_v35 = vsel %vm329_vm6, %v1609_v16, %v1617_v30  ;;  %v1626_v40 = vsel %vm329_vm6, %v1617_v30, %v1609_v16 }
 0x263   : > { %4068 = vmatmul.mubr.msk.f32.gmra.mrb[10].mxu1 %vm1677_vm10, %v4064_v28  ;;  %4164 = vmatprep.subr.bf16.mxu1 %v4163_v34  ;;  %v1632_v45 = vmul.f32 %v1626_v40, %v4845_v60  ;;  %v1633_v47 = vmul.f32 %v1622_v35, %v4833_v55 }
 0x264   : > { %4166 = vmatpush1.bf16.msra.mxu1 %v4165_v29  ;;  %1766 = vmatprep.mubr.f32.mxu1 %v6185_v0  ;;  %v1638_v29 = vld [vmem:[%s6172_s4 + $0x10] sm:$0xff] }
 0x265   : > { %v1881_v41 = vpop.permute.xlu1 %1880  ;;  %v1619_v42 = vpop.permute.xlu0 %1618 }
 0x266   : > { %v1623_v43 = vsel %vm329_vm6, %v1611_v32, %v1619_v42  ;;  %v1627_v44 = vsel %vm329_vm6, %v1619_v42, %v1611_v32 }
 0x267   : > { %v1634_v49 = vmul.f32 %v1627_v44, %v4845_v60  ;;  %v1635_v50 = vmul.f32 %v1623_v43, %v4833_v55  ;;  %4069 = vmatmul.mubr.msk.f32.gmra.mrb[12].mxu1 %vm1677_vm10, %v4065_v36  ;;  %v1639_v43 = vld [vmem:[%s6172_s4 + $0x18] sm:$0xff] }
 0x268   : > { %1772 = vmatprep.mubr.f32.mxu1 %v6185_v0 }
 0x269   : > { %v4169_v52 = vpack.c.bf16 %v1634_v49, %v1632_v45  ;;  %v1889_v53 = vpop.permute.xlu1 %1888  ;;  %v1883_v58 = vpop.permute.xlu0 %1882  ;;  %v4167_v59 = vpack.c.bf16 %v1635_v50, %v1633_v47 }
 0x26a   : > { %v1896_v61 = vsel %vm594_vm0, %v1881_v41, %v1889_v53  ;;  %v1900_v11 = vsel %vm594_vm0, %v1889_v53, %v1881_v41 }
 0x26b   : > { %4070 = vmatmul.mubr.msk.f32.gmra.mrb[14].mxu1 %vm1677_vm10, %v4066_v12  ;;  %4168 = vmatprep.subr.bf16.mxu1 %v4167_v59  ;;  %v1904_v6 = vmul.f32 %v1900_v11, %v4738_v18  ;;  %v1905_v13 = vmul.f32 %v1896_v61, %v4741_v19 }
 0x26c   : > { %4170 = vmatpush1.bf16.msra.mxu1 %v4169_v52  ;;  %1855 = vmatprep.mubr.f32.mxu1 %v6185_v0  ;;  %v4075_v52 = vld [vmem:[%s6172_s4 + $0x40] sm:$0xff] }
 0x26d   : > { %v1885_v63 = vpop.permute.xlu1 %1884  ;;  %v1891_v4 = vpop.permute.xlu0 %1890 }
 0x26e   : > { %v1897_v5 = vsel %vm594_vm0, %v1883_v58, %v1891_v4  ;;  %v1901_v1 = vsel %vm594_vm0, %v1891_v4, %v1883_v58 }
 0x26f   : > { %v1906_v16 = vmul.f32 %v1901_v1, %v4738_v18  ;;  %v1907_v21 = vmul.f32 %v1897_v5, %v4741_v19  ;;  %4071 = vmatmul.mubr.msk.f32.vlgmr.msra.gmra.mrb[8].mxu1 %vm1677_vm10, %v1636_v62  ;;  %v4076_v5 = vld [vmem:[%s6172_s4 + $0x48] sm:$0xff] }
 0x270   : > { %1861 = vmatprep.mubr.f32.mxu1 %v6185_v0 }
 0x271   : > { %v4173_v23 = vpack.c.bf16 %v1906_v16, %v1904_v6  ;;  %v1893_v24 = vpop.permute.xlu1 %1892  ;;  %v1887_v25 = vpop.permute.xlu0 %1886  ;;  %v4171_v26 = vpack.c.bf16 %v1907_v21, %v1905_v13 }
 0x272   : > { %v1898_v27 = vsel %vm594_vm0, %v1885_v63, %v1893_v24  ;;  %v1902_v28 = vsel %vm594_vm0, %v1893_v24, %v1885_v63 }
 0x273   : > { %4072 = vmatmul.mubr.msk.f32.gmra.mrb[10].mxu1 %vm1677_vm10, %v1637_v22  ;;  %4172 = vmatprep.subr.bf16.mxu1 %v4171_v26  ;;  %v1908_v40 = vmul.f32 %v1902_v28, %v4738_v18  ;;  %v1909_v36 = vmul.f32 %v1898_v27, %v4741_v19 }
 0x274   : > { %4174 = vmatpush1.bf16.msra.mxu1 %v4173_v23  ;;  %1867 = vmatprep.mubr.f32.mxu1 %v6185_v0  ;;  %v4077_v23 = vld [vmem:[%s6172_s4 + $0x50] sm:$0xff] }
 0x275   : > { %v2027_v30 = vpop.permute.xlu1 %2026  ;;  %v1895_v32 = vpop.permute.xlu0 %1894 }
 0x276   : > { %v1899_v34 = vsel %vm594_vm0, %v1887_v25, %v1895_v32  ;;  %v1903_v35 = vsel %vm594_vm0, %v1895_v32, %v1887_v25 }
 0x277   : > { %v1910_v41 = vmul.f32 %v1903_v35, %v4738_v18  ;;  %v1911_v42 = vmul.f32 %v1899_v34, %v4741_v19  ;;  %4073 = vmatmul.mubr.msk.f32.gmra.mrb[12].mxu1 %vm1677_vm10, %v1638_v29  ;;  %v4078_v34 = vld [vmem:[%s6172_s4 + $0x58] sm:$0xff] }
 0x278   : > { %1873 = vmatprep.mubr.f32.mxu1 %v6185_v0 }
 0x279   : > { %v4177_v44 = vpack.c.bf16 %v1910_v41, %v1908_v40  ;;  %v2035_v45 = vpop.permute.xlu1 %2034  ;;  %v2029_v47 = vpop.permute.xlu0 %2028  ;;  %v4175_v49 = vpack.c.bf16 %v1911_v42, %v1909_v36  ;;  %v4187_v42 = vpack.c.bf16 %v5090_v2, %v5082_v54  ;;  %v4191_v2 = vpack.c.bf16 %v5106_v14, %v5098_v7  ;;  %v4085_v7 = vld [vmem:[%s6172_s4 + $0x70] sm:$0xff] }
 0x27a   : > { %v2042_v50 = vsel %vm734_vm1, %v2027_v30, %v2035_v45  ;;  %v2046_v12 = vsel %vm734_vm1, %v2035_v45, %v2027_v30 }
 0x27b   : > { %4074 = vmatmul.mubr.msk.f32.gmra.mrb[14].mxu1 %vm1677_vm10, %v1639_v43  ;;  %4176 = vmatprep.subr.bf16.mxu1 %v4175_v49  ;;  %v2050_v11 = vmul.f32 %v2046_v12, %v4744_v20  ;;  %v2051_v62 = vmul.f32 %v2042_v50, %v4735_v17  ;;  %v4083_v43 = vld [vmem:[%s6172_s4 + $0x60] sm:$0xff]  ;;  %v4189_v50 = vpack.c.bf16 %v5084_v56, %v5078_v37  ;;  %v4084_v12 = vld [vmem:[%s6172_s4 + $0x68] sm:$0xff] }
 0x27c   : > { %4178 = vmatpush1.bf16.msra.mxu1 %v4177_v44  ;;  %1993 = vmatprep.mubr.f32.mxu1 %v6185_v0  ;;  %v4193_v37 = vpack.c.bf16 %v5100_v8, %v5092_v3  ;;  %v4086_v8 = vld [vmem:[%s6172_s4 + $0x78] sm:$0xff] }
 0x27d   : > { %v2031_v53 = vpop.permute.xlu1 %2030  ;;  %v2037_v58 = vpop.permute.xlu0 %2036 }
 0x27e   : > { %v2043_v59 = vsel %vm734_vm1, %v2029_v47, %v2037_v58  ;;  %v2047_v61 = vsel %vm734_vm1, %v2037_v58, %v2029_v47 }
 0x27f   : > { %v2052_v63 = vmul.f32 %v2047_v61, %v4744_v20  ;;  %v2053_v4 = vmul.f32 %v2043_v59, %v4735_v17  ;;  %4079 = vmatmul.mubr.msk.f32.vlgmr.msra.gmra.mrb[8].mxu1 %vm1677_vm10, %v4075_v52 }
 0x280   : > { %1999 = vmatprep.mubr.f32.mxu1 %v6185_v0 }
 0x281   : > { %v4181_v1 = vpack.c.bf16 %v2052_v63, %v2050_v11  ;;  %v2039_v6 = vpop.permute.xlu1 %2038  ;;  %v2033_v13 = vpop.permute.xlu0 %2032  ;;  %v4179_v16 = vpack.c.bf16 %v2053_v4, %v2051_v62 }
 0x282   : > { %v2044_v21 = vsel %vm734_vm1, %v2031_v53, %v2039_v6  ;;  %v2048_v22 = vsel %vm734_vm1, %v2039_v6, %v2031_v53 }
 0x283   : > { %4080 = vmatmul.mubr.msk.f32.gmra.mrb[10].mxu1 %vm1677_vm10, %v4076_v5  ;;  %4180 = vmatprep.subr.bf16.mxu1 %v4179_v16  ;;  %v2054_v28 = vmul.f32 %v2048_v22, %v4744_v20  ;;  %v2055_v29 = vmul.f32 %v2044_v21, %v4735_v17  ;;  %v4091_v21 = vld [vmem:[%s6172_s4 + $0x80] sm:$0xff] }
 0x284   : > { %4182 = vmatpush1.bf16.msra.mxu1 %v4181_v1  ;;  %2005 = vmatprep.mubr.f32.mxu1 %v6185_v0 }
 0x285   : > { %v2287_v24 = vpop.permute.xlu1 %2286  ;;  %v2041_v25 = vpop.permute.xlu0 %2040 }
 0x286   : > { %v2045_v26 = vsel %vm734_vm1, %v2033_v13, %v2041_v25  ;;  %v2049_v27 = vsel %vm734_vm1, %v2041_v25, %v2033_v13 }
 0x287   : > { %v2056_v30 = vmul.f32 %v2049_v27, %v4744_v20  ;;  %v2057_v32 = vmul.f32 %v2045_v26, %v4735_v17  ;;  %4081 = vmatmul.mubr.msk.f32.gmra.mrb[12].mxu1 %vm1677_vm10, %v4077_v23 }
 0x288   : > { %2011 = vmatprep.mubr.f32.mxu1 %v6185_v0 }
 0x289   : > { %v4185_v35 = vpack.c.bf16 %v2056_v30, %v2054_v28  ;;  %v2295_v40 = vpop.permute.xlu1 %2294  ;;  %v2289_v36 = vpop.permute.xlu0 %2288  ;;  %v4183_v41 = vpack.c.bf16 %v2057_v32, %v2055_v29 }
 0x28a   : > { %v2306_v47 = vsel %vm992_vm5, %v2295_v40, %v2287_v24  ;;  %v2302_v11 = vsel %vm992_vm5, %v2287_v24, %v2295_v40 }
 0x28b   : > { %4082 = vmatmul.mubr.msk.f32.gmra.mrb[14].mxu1 %vm1677_vm10, %v4078_v34  ;;  %4184 = vmatprep.subr.bf16.mxu1 %v4183_v41  ;;  %v2311_v52 = vmul.f32 %v2306_v47, %v4817_v51  ;;  %v2310_v13 = vmul.f32 %v2302_v11, %v4889_v9 }
 0x28c   : > { %4186 = vmatpush1.bf16.msra.mxu1 %v4185_v35  ;;  %2139 = vmatprep.mubr.f32.mxu1 %v6185_v0  ;;  %v4092_v35 = vld [vmem:[%s6172_s4 + $0x88] sm:$0xff] }
 0x28d   : > { %v2291_v44 = vpop.permute.xlu1 %2290  ;;  %4188 = vmatprep.subr.bf16.mxu1 %v4187_v42  ;;  %v2297_v45 = vpop.permute.xlu0 %2296 }
 0x28e   : > { %v2307_v49 = vsel %vm992_vm5, %v2297_v45, %v2289_v36  ;;  %v2303_v61 = vsel %vm992_vm5, %v2289_v36, %v2297_v45 }
 0x28f   : > { %v2313_v54 = vmul.f32 %v2307_v49, %v4817_v51  ;;  %4087 = vmatmul.mubr.msk.f32.vlgmr.msra.gmra.mrb[8].mxu1 %vm1677_vm10, %v4083_v43  ;;  %v2312_v4 = vmul.f32 %v2303_v61, %v4889_v9  ;;  %v4093_v43 = vld [vmem:[%s6172_s4 + $0x90] sm:$0xff] }
 0x290   : > { %4190 = vmatpush1.bf16.msra.mxu1 %v4189_v50  ;;  %2145 = vmatprep.mubr.f32.mxu1 %v6185_v0  ;;  %v4094_v50 = vld [vmem:[%s6172_s4 + $0x98] sm:$0xff] }
 0x291   : > { %v2299_v53 = vpop.permute.xlu1 %2298  ;;  %4192 = vmatprep.subr.bf16.mxu1 %v4191_v2  ;;  %v2293_v58 = vpop.permute.xlu0 %2292  ;;  %v4195_v56 = vpack.c.bf16 %v2313_v54, %v2311_v52  ;;  %v4197_v26 = vpack.c.bf16 %v2312_v4, %v2310_v13  ;;  %v4100_v13 = vld [vmem:[%s6172_s4 + $0xa8] sm:$0xff] }
 0x292   : > { %v2308_v5 = vsel %vm992_vm5, %v2299_v53, %v2291_v44  ;;  %v2304_v22 = vsel %vm992_vm5, %v2291_v44, %v2299_v53 }
 0x293   : > { %4088 = vmatmul.mubr.msk.f32.gmra.mrb[10].mxu1 %vm1677_vm10, %v4084_v12  ;;  %v2315_v23 = vmul.f32 %v2308_v5, %v4817_v51  ;;  %v2314_v34 = vmul.f32 %v2304_v22, %v4889_v9 }
 0x294   : > { %4194 = vmatpush1.bf16.msra.mxu1 %v4193_v37  ;;  %2151 = vmatprep.mubr.f32.mxu1 %v6185_v0 }
 0x295   : > { %v2433_v14 = vpop.permute.xlu1 %2432  ;;  %4196 = vmatprep.subr.bf16.mxu1 %v4195_v56  ;;  %v2301_v59 = vpop.permute.xlu0 %2300 }
 0x296   : > { %v2309_v3 = vsel %vm992_vm5, %v2301_v59, %v2293_v58  ;;  %v2305_v1 = vsel %vm992_vm5, %v2293_v58, %v2301_v59 }
 0x297   : > { %4089 = vmatmul.mubr.msk.f32.gmra.mrb[12].mxu1 %vm1677_vm10, %v4085_v7  ;;  %v2317_v6 = vmul.f32 %v2309_v3, %v4817_v51  ;;  %v2316_v27 = vmul.f32 %v2305_v1, %v4889_v9 }
 0x298   : > { %2157 = vmatprep.mubr.f32.mxu1 %v6185_v0 }
 0x299   : > { %v2441_v62 = vpop.permute.xlu1 %2440  ;;  %v2435_v63 = vpop.permute.xlu0 %2434  ;;  %v4199_v32 = vpack.c.bf16 %v2317_v6, %v2315_v23  ;;  %v4201_v42 = vpack.c.bf16 %v2316_v27, %v2314_v34 }
 0x29a   : > { %v2452_v16 = vsel %vm1132_vm7, %v2441_v62, %v2433_v14  ;;  %v2448_v54 = vsel %vm1132_vm7, %v2433_v14, %v2441_v62  ;;  %v4099_v14 = vld [vmem:[%s6172_s4 + $0xa0] sm:$0xff] }
 0x29b   : > { %4090 = vmatmul.mubr.msk.f32.gmra.mrb[14].mxu1 %vm1677_vm10, %v4086_v8  ;;  %v2457_v29 = vmul.f32 %v2452_v16, %v4900_v15  ;;  %v2456_v56 = vmul.f32 %v2448_v54, %v4951_v31 }
 0x29c   : > { %2253 = vmatprep.mubr.f32.mxu1 %v6185_v0 }
 0x29d   : > { %v2437_v24 = vpop.permute.xlu1 %2436  ;;  %v2443_v25 = vpop.permute.xlu0 %2442 }
 0x29e   : > { %v2453_v28 = vsel %vm1132_vm7, %v2443_v25, %v2435_v63  ;;  %v2449_v47 = vsel %vm1132_vm7, %v2435_v63, %v2443_v25 }
 0x29f   : > { %v2459_v30 = vmul.f32 %v2453_v28, %v4900_v15  ;;  %4095 = vmatmul.mubr.msk.f32.vlgmr.msra.gmra.mrb[8].mxu1 %vm1677_vm10, %v4091_v21  ;;  %v2458_v52 = vmul.f32 %v2449_v47, %v4951_v31 }
 0x2a0   : > { %4198 = vmatpush1.bf16.msra.mxu1 %v4197_v26  ;;  %2259 = vmatprep.mubr.f32.mxu1 %v6185_v0 }
 0x2a1   : > { %4200 = vmatprep.subr.bf16.mxu1 %v4199_v32  ;;  %v2445_v40 = vpop.permute.xlu1 %2444  ;;  %v2439_v36 = vpop.permute.xlu0 %2438  ;;  %v4203_v41 = vpack.c.bf16 %v2459_v30, %v2457_v29  ;;  %v4205_v11 = vpack.c.bf16 %v2458_v52, %v2456_v56  ;;  %v4102_v29 = vld [vmem:[%s6172_s4 + $0xb8] sm:$0xff] }
 0x2a2   : > { %v2454_v53 = vsel %vm1132_vm7, %v2445_v40, %v2437_v24  ;;  %v2450_v59 = vsel %vm1132_vm7, %v2437_v24, %v2445_v40  ;;  %v4101_v24 = vld [vmem:[%s6172_s4 + $0xb0] sm:$0xff] }
 0x2a3   : > { %4096 = vmatmul.mubr.msk.f32.gmra.mrb[10].mxu1 %vm1677_vm10, %v4092_v35  ;;  %v2461_v61 = vmul.f32 %v2454_v53, %v4900_v15  ;;  %v2460_v6 = vmul.f32 %v2450_v59, %v4951_v31 }
 0x2a4   : > { %4202 = vmatpush1.bf16.msra.mxu1 %v4201_v42  ;;  %2265 = vmatprep.mubr.f32.mxu1 %v6185_v0 }
 0x2a5   : > { %4204 = vmatprep.subr.bf16.mxu1 %v4203_v41  ;;  %v2579_v44 = vpop.permute.xlu1 %2578  ;;  %v2447_v45 = vpop.permute.xlu0 %2446 }
 0x2a6   : > { %v2455_v49 = vsel %vm1132_vm7, %v2447_v45, %v2439_v36  ;;  %v2451_v58 = vsel %vm1132_vm7, %v2439_v36, %v2447_v45 }
 0x2a7   : > { %4097 = vmatmul.mubr.msk.f32.gmra.mrb[12].mxu1 %vm1677_vm10, %v4093_v43  ;;  %v2463_v37 = vmul.f32 %v2455_v49, %v4900_v15  ;;  %v2462_v62 = vmul.f32 %v2451_v58, %v4951_v31 }
 0x2a8   : > { %2271 = vmatprep.mubr.f32.mxu1 %v6185_v0 }
 0x2a9   : > { %v2587_v2 = vpop.permute.xlu1 %2586  ;;  %v2581_v12 = vpop.permute.xlu0 %2580  ;;  %v4207_v1 = vpack.c.bf16 %v2463_v37, %v2461_v61  ;;  %v4209_v23 = vpack.c.bf16 %v2462_v62, %v2460_v6  ;;  %v4108_v37 = vld [vmem:[%s6172_s4 + $0xc8] sm:$0xff]  ;;  %v4109_v61 = vld [vmem:[%s6172_s4 + $0xd0] sm:$0xff] }
 0x2aa   : > { %v2598_v7 = vsel %vm1272_vm8, %v2587_v2, %v2579_v44  ;;  %v2594_v30 = vsel %vm1272_vm8, %v2579_v44, %v2587_v2  ;;  %v4107_v44 = vld [vmem:[%s6172_s4 + $0xc0] sm:$0xff] }
 0x2ab   : > { %4098 = vmatmul.mubr.msk.f32.gmra.mrb[14].mxu1 %vm1677_vm10, %v4094_v50  ;;  %v2603_v4 = vmul.f32 %v2598_v7, %v4959_v33  ;;  %v2602_v42 = vmul.f32 %v2594_v30, %v4994_v46  ;;  %v4117_v30 = vld [vmem:[%s6172_s4 + $0xf0] sm:$0xff] }
 0x2ac   : > { %2399 = vmatprep.mubr.f32.mxu1 %v6185_v0 }
 0x2ad   : > { %v2583_v3 = vpop.permute.xlu1 %2582  ;;  %v2589_v8 = vpop.permute.xlu0 %2588 }
 0x2ae   : > { %v2599_v63 = vsel %vm1272_vm8, %v2589_v8, %v2581_v12  ;;  %v2595_v27 = vsel %vm1272_vm8, %v2581_v12, %v2589_v8 }
 0x2af   : > { %v2605_v5 = vmul.f32 %v2599_v63, %v4959_v33  ;;  %4103 = vmatmul.mubr.msk.f32.vlgmr.msra.gmra.mrb[8].mxu1 %vm1677_vm10, %v4099_v14  ;;  %v2604_v35 = vmul.f32 %v2595_v27, %v4994_v46  ;;  %v4110_v63 = vld [vmem:[%s6172_s4 + $0xd8] sm:$0xff] }
 0x2b0   : > { %4206 = vmatpush1.bf16.msra.mxu1 %v4205_v11  ;;  %2405 = vmatprep.mubr.f32.mxu1 %v6185_v0 }
 0x2b1   : > { %4208 = vmatprep.subr.bf16.mxu1 %v4207_v1  ;;  %v2591_v16 = vpop.permute.xlu1 %2590  ;;  %v2585_v21 = vpop.permute.xlu0 %2584  ;;  %v4211_v22 = vpack.c.bf16 %v2605_v5, %v2603_v4  ;;  %v4213_v50 = vpack.c.bf16 %v2604_v35, %v2602_v42  ;;  %v4124_v35 = vld [vmem:[%s6172_s4 + $0x108] sm:$0xff] }
 0x2b2   : > { %v2600_v40 = vsel %vm1272_vm8, %v2591_v16, %v2583_v3  ;;  %v2596_v45 = vsel %vm1272_vm8, %v2583_v3, %v2591_v16 }
 0x2b3   : > { %4104 = vmatmul.mubr.msk.f32.gmra.mrb[10].mxu1 %vm1677_vm10, %v4100_v13  ;;  %v2607_v47 = vmul.f32 %v2600_v40, %v4959_v33  ;;  %v2606_v58 = vmul.f32 %v2596_v45, %v4994_v46  ;;  %v4125_v40 = vld [vmem:[%s6172_s4 + $0x110] sm:$0xff] }
 0x2b4   : > { %4210 = vmatpush1.bf16.msra.mxu1 %v4209_v23  ;;  %2411 = vmatprep.mubr.f32.mxu1 %v6185_v0 }
 0x2b5   : > { %4212 = vmatprep.subr.bf16.mxu1 %v4211_v22  ;;  %v2725_v25 = vpop.permute.xlu1 %2724  ;;  %v2593_v26 = vpop.permute.xlu0 %2592 }
 0x2b6   : > { %v2601_v28 = vsel %vm1272_vm8, %v2593_v26, %v2585_v21  ;;  %v2597_v36 = vsel %vm1272_vm8, %v2585_v21, %v2593_v26  ;;  %v4115_v21 = vld [vmem:[%s6172_s4 + $0xe0] sm:$0xff] }
 0x2b7   : > { %4105 = vmatmul.mubr.msk.f32.gmra.mrb[12].mxu1 %vm1677_vm10, %v4101_v24  ;;  %v2609_v41 = vmul.f32 %v2601_v28, %v4959_v33  ;;  %v2608_v54 = vmul.f32 %v2597_v36, %v4994_v46  ;;  %v4116_v28 = vld [vmem:[%s6172_s4 + $0xe8] sm:$0xff]  ;;  %v4126_v36 = vld [vmem:[%s6172_s4 + $0x118] sm:$0xff] }
 0x2b8   : > { %2417 = vmatprep.mubr.f32.mxu1 %v6185_v0 }
 0x2b9   : > { %v2733_v32 = vpop.permute.xlu1 %2732  ;;  %v2727_v34 = vpop.permute.xlu0 %2726  ;;  %v4215_v53 = vpack.c.bf16 %v2609_v41, %v2607_v47  ;;  %v4217_v59 = vpack.c.bf16 %v2608_v54, %v2606_v58 }
 0x2ba   : > { %v2744_v43 = vsel %vm1412_vm9, %v2733_v32, %v2725_v25  ;;  %v2740_v4 = vsel %vm1412_vm9, %v2725_v25, %v2733_v32  ;;  %v4118_v32 = vld [vmem:[%s6172_s4 + $0xf8] sm:$0xff] }
 0x2bb   : > { %4106 = vmatmul.mubr.msk.f32.gmra.mrb[14].mxu1 %vm1677_vm10, %v4102_v29  ;;  %v2749_v12 = vmul.f32 %v2744_v43, %v5001_v48  ;;  %v2748_v16 = vmul.f32 %v2740_v4, %v5030_v57 }
 0x2bc   : > { %2545 = vmatprep.mubr.f32.mxu1 %v6185_v0 }
 0x2bd   : > { %v2735_v49 = vpop.permute.xlu0 %2734  ;;  %v2729_v56 = vpop.permute.xlu1 %2728 }
 0x2be   : > { %v2745_v2 = vsel %vm1412_vm9, %v2735_v49, %v2727_v34  ;;  %v2741_v8 = vsel %vm1412_vm9, %v2727_v34, %v2735_v49  ;;  %v4123_v34 = vld [vmem:[%s6172_s4 + $0x100] sm:$0xff] }
 0x2bf   : > { %v2751_v52 = vmul.f32 %v2745_v2, %v5001_v48  ;;  %4111 = vmatmul.mubr.msk.f32.vlgmr.msra.gmra.mrb[8].mxu1 %vm1677_vm10, %v4107_v44  ;;  %v2750_v5 = vmul.f32 %v2741_v8, %v5030_v57 }
 0x2c0   : > { %4214 = vmatpush1.bf16.msra.mxu1 %v4213_v50  ;;  %2551 = vmatprep.mubr.f32.mxu1 %v6185_v0 }
 0x2c1   : > { %4216 = vmatprep.subr.bf16.mxu1 %v4215_v53  ;;  %v2731_v7 = vpop.permute.xlu0 %2730  ;;  %v4219_v14 = vpack.c.bf16 %v2751_v52, %v2749_v12  ;;  %v2737_v11 = vpop.permute.xlu1 %2736  ;;  %v4221_v24 = vpack.c.bf16 %v2750_v5, %v2748_v16 }
 0x2c2   : > { %v2746_v1 = vsel %vm1412_vm9, %v2737_v11, %v2729_v56  ;;  %v2742_v22 = vsel %vm1412_vm9, %v2729_v56, %v2737_v11 }
 0x2c3   : > { %4112 = vmatmul.mubr.msk.f32.gmra.mrb[10].mxu1 %vm1677_vm10, %v4108_v37  ;;  %v2753_v23 = vmul.f32 %v2746_v1, %v5001_v48  ;;  %v2752_v27 = vmul.f32 %v2742_v22, %v5030_v57 }
 0x2c4   : > { %4218 = vmatpush1.bf16.msra.mxu1 %v4217_v59  ;;  %2557 = vmatprep.mubr.f32.mxu1 %v6185_v0 }
 0x2c5   : > { %4220 = vmatprep.subr.bf16.mxu1 %v4219_v14  ;;  %v2739_v3 = vpop.permute.xlu0 %2738 }
 0x2c6   : > { %v2747_v62 = vsel %vm1412_vm9, %v2739_v3, %v2731_v7  ;;  %v2743_v6 = vsel %vm1412_vm9, %v2731_v7, %v2739_v3 }
 0x2c7   : > { %4113 = vmatmul.mubr.msk.f32.gmra.mrb[12].mxu1 %vm1677_vm10, %v4109_v61  ;;  %v2755_v13 = vmul.f32 %v2747_v62, %v5001_v48  ;;  %v2754_v25 = vmul.f32 %v2743_v6, %v5030_v57 }
 0x2c8   : > { %2563 = vmatprep.mubr.f32.mxu1 %v6185_v0 }
 0x2c9   : > { %v4223_v26 = vpack.c.bf16 %v2755_v13, %v2753_v23  ;;  %v4225_v29 = vpack.c.bf16 %v2754_v25, %v2752_v27 }
 0x2cb   : > { %4114 = vmatmul.mubr.msk.f32.gmra.mrb[14].mxu1 %vm1677_vm10, %v4110_v63 }
 0x2cc   : > { %2691 = vmatprep.mubr.f32.mxu1 %v6185_v0 }
 0x2cf   : > { %4119 = vmatmul.mubr.msk.f32.vlgmr.msra.gmra.mrb[8].mxu1 %vm1677_vm10, %v4115_v21 }
 0x2d0   : > { %4222 = vmatpush1.bf16.msra.mxu1 %v4221_v24  ;;  %2697 = vmatprep.mubr.f32.mxu1 %v6185_v0 }
 0x2d1   : > { %4224 = vmatprep.subr.bf16.mxu1 %v4223_v26 }
 0x2d2   : > { %v2877_v41 = vpop.permute.xlu1 %2876 }
 0x2d3   : > { %4120 = vmatmul.mubr.msk.f32.gmra.mrb[10].mxu1 %vm1677_vm10, %v4116_v28 }
 0x2d4   : > { %4226 = vmatpush1.bf16.msra.mxu1 %v4225_v29  ;;  %2703 = vmatprep.mubr.f32.mxu1 %v6185_v0 }
 0x2d6   : > { %v2882_v47 = vpop.permute.xlu0 %2881  ;;  %v2887_v11 = vpop.permute.xlu1 %2886 }
 0x2d7   : > { %4121 = vmatmul.mubr.msk.f32.gmra.mrb[12].mxu1 %vm1677_vm10, %v4117_v30 }
 0x2d8   : > { %2709 = vmatprep.mubr.f32.mxu1 %v6185_v0 }
 0x2da   : > { %v2892_v63 = vpop.permute.xlu0 %2891 }
 0x2db   : > { %4122 = vmatmul.mubr.msk.f32.gmra.mrb[14].mxu1 %vm1677_vm10, %v4118_v32  ;;  %v3879_v32 = vld [vmem:[%s6175_s7] sm:$0xff] }
 0x2dc   : > { %2837 = vmatprep.mubr.f32.mxu1 %v6185_v0 }
 0x2df   : > { %4127 = vmatmul.mubr.msk.f32.vlgmr.msra.gmra.mrb[8].mxu1 %vm1677_vm10, %v4123_v34 }
 0x2e0   : > { %2843 = vmatprep.mubr.f32.mxu1 %v6185_v0 }
 0x2e3   : > { %4128 = vmatmul.mubr.msk.f32.gmra.mrb[10].mxu1 %vm1677_vm10, %v4124_v35 }
 0x2e4   : > { %2849 = vmatprep.mubr.f32.mxu1 %v6185_v0 }
 0x2e7   : > { %4129 = vmatmul.mubr.msk.f32.gmra.mrb[12].mxu1 %vm1677_vm10, %v4125_v40 }
 0x2e8   : > { %2855 = vmatprep.mubr.f32.mxu1 %v6185_v0 }
 0x2eb   : > { %4130 = vmatmul.mubr.msk.f32.gmra.mrb[14].mxu1 %vm1677_vm10, %v4126_v36 }
 0x3b2   : > { %v2839_v42 = vpop.f32.mrb[8].mxu1 }
 0x3b3   : > { %v2894_v43 = vadd.f32 %v2877_v41, %v2839_v42  ;;  %v2841_v44 = vpop.f32.mrb[9].mxu1 }
 0x3b4   : > { %v2895_v7 = vadd.f32 %v2877_v41, %v2841_v44 }
 0x3b5   : > { %vm2902_vm11 = vcmp.ge.f32.partialorder %v2894_v43, 0.0  ;;  %v2910_v45 = vmul.f32 0.2, %v2894_v43 }
 0x3b6   : > { %v2845_v49 = vpop.f32.mrb[10].mxu1  ;;  %v2911_v14 = vmul.f32 0.2, %v2895_v7  ;;  %vm2903_vm13 = vcmp.ge.f32.partialorder %v2895_v7, 0.0 }
 0x3b7   : > { %v5613_v50 = vsel %vm2902_vm11, %v2894_v43, %v2910_v45  ;;  %v2896_v54 = vadd.f32 %v2882_v47, %v2845_v49  ;;  %v2847_v2 = vpop.f32.mrb[11].mxu1 }
 0x3b8   : > { %2959 = vrot.lane.b32.xlu1 %v5613_v50, %s4564_s26  ;;  %v2897_v59 = vadd.f32 %v2882_v47, %v2847_v2  ;;  %v5635_v61 = vsel %vm2903_vm13, %v2895_v7, %v2911_v14 }
 0x3b9   : > { %vm2904_vm12 = vcmp.ge.f32.partialorder %v2896_v54, 0.0  ;;  %v2912_v12 = vmul.f32 0.2, %v2896_v54 }
 0x3ba   : > { %v2851_v52 = vpop.f32.mrb[12].mxu1  ;;  %v2913_v3 = vmul.f32 0.2, %v2897_v59  ;;  %vm2905_vm14 = vcmp.ge.f32.partialorder %v2897_v59, 0.0 }
 0x3bb   : > { %v5617_v53 = vsel %vm2904_vm12, %v2896_v54, %v2912_v12  ;;  %v2853_v58 = vpop.f32.mrb[13].mxu1  ;;  %v2898_v62 = vadd.f32 %v2887_v11, %v2851_v52 }
 0x3bc   : > { %2926 = vrot.lane.b32.xlu1 %v5613_v50, %s4566_s12  ;;  %2961 = vrot.lane.b32.xlu0 %v5617_v53, %s4564_s26  ;;  %v5641_v8 = vsel %vm2905_vm14, %v2897_v59, %v2913_v3  ;;  %v2899_v16 = vadd.f32 %v2887_v11, %v2853_v58 }
 0x3bd   : > { %v2914_v4 = vmul.f32 0.2, %v2898_v62  ;;  %vm2906_vm15 = vcmp.ge.f32.partialorder %v2898_v62, 0.0 }
 0x3be   : > { %v2857_v37 = vpop.f32.mrb[14].mxu1  ;;  %v2915_v21 = vmul.f32 0.2, %v2899_v16  ;;  %vm2907_vm3 = vcmp.ge.f32.partialorder %v2899_v16, 0.0 }
 0x3bf   : > { %v2859_v56 = vpop.f32.mrb[15].mxu1  ;;  %v2900_v5 = vadd.f32 %v2892_v63, %v2857_v37  ;;  %v5659_v1 = vsel %vm2906_vm15, %v2898_v62, %v2914_v4 }
 0x3c0   : > { %3141 = vrot.lane.b32.xlu1 %v5613_v50, %s4560_s22  ;;  %2928 = vrot.lane.b32.xlu0 %v5617_v53, %s4566_s12  ;;  %v2901_v22 = vadd.f32 %v2892_v63, %v2859_v56  ;;  %v5683_v23 = vsel %vm2907_vm3, %v2899_v16, %v2915_v21 }
 0x3c1   : > { %v2916_v6 = vmul.f32 0.2, %v2900_v5  ;;  %vm2908_vm2 = vcmp.ge.f32.partialorder %v2900_v5, 0.0 }
 0x3c2   : > { %v2917_v24 = vmul.f32 0.2, %v2901_v22  ;;  %vm2909_vm11 = vcmp.ge.f32.partialorder %v2901_v22, 0.0 }
 0x3c3   : > { %v5665_v13 = vsel %vm2908_vm2, %v2900_v5, %v2916_v6 }
 0x3c4   : > { %3251 = vrot.lane.b32.xlu1 %v5613_v50, %s4561_s23  ;;  %3143 = vrot.lane.b32.xlu0 %v5617_v53, %s4560_s22  ;;  %v5689_v25 = vsel %vm2909_vm11, %v2901_v22, %v2917_v24 }
 0x3c8   : > { %3439 = vrot.lane.b32.xlu1 %v5613_v50, %s6204_s20  ;;  %3253 = vrot.lane.b32.xlu0 %v5617_v53, %s4561_s23 }
 0x3cc   : > { %2967 = vrot.lane.b32.xlu1 %v5635_v61, %s4564_s26  ;;  %3441 = vrot.lane.b32.xlu0 %v5617_v53, %s6204_s20 }
 0x3d0   : > { %2934 = vrot.lane.b32.xlu1 %v5635_v61, %s4566_s12  ;;  %2969 = vrot.lane.b32.xlu0 %v5641_v8, %s4564_s26 }
 0x3d4   : > { %3149 = vrot.lane.b32.xlu1 %v5635_v61, %s4560_s22  ;;  %2936 = vrot.lane.b32.xlu0 %v5641_v8, %s4566_s12 }
 0x3d8   : > { %3259 = vrot.lane.b32.xlu1 %v5635_v61, %s4561_s23  ;;  %3151 = vrot.lane.b32.xlu0 %v5641_v8, %s4560_s22 }
 0x3dc   : > { %3447 = vrot.lane.b32.xlu1 %v5635_v61, %s6204_s20  ;;  %3261 = vrot.lane.b32.xlu0 %v5641_v8, %s4561_s23 }
 0x3e0   : > { %2963 = vrot.lane.b32.xlu1 %v5659_v1, %s4564_s26  ;;  %3449 = vrot.lane.b32.xlu0 %v5641_v8, %s6204_s20 }
 0x3e4   : > { %2930 = vrot.lane.b32.xlu1 %v5659_v1, %s4566_s12  ;;  %2965 = vrot.lane.b32.xlu0 %v5665_v13, %s4564_s26 }
 0x3e8   : > { %3145 = vrot.lane.b32.xlu1 %v5659_v1, %s4560_s22  ;;  %2932 = vrot.lane.b32.xlu0 %v5665_v13, %s4566_s12 }
 0x3ec   : > { %3255 = vrot.lane.b32.xlu1 %v5659_v1, %s4561_s23  ;;  %3147 = vrot.lane.b32.xlu0 %v5665_v13, %s4560_s22 }
 0x3f0   : > { %3443 = vrot.lane.b32.xlu1 %v5659_v1, %s6204_s20  ;;  %3257 = vrot.lane.b32.xlu0 %v5665_v13, %s4561_s23 }
 0x3f4   : > { %2971 = vrot.lane.b32.xlu1 %v5683_v23, %s4564_s26  ;;  %3445 = vrot.lane.b32.xlu0 %v5665_v13, %s6204_s20 }
 0x3f8   : > { %3549 = vrot.lane.b32.xlu1 %v5613_v50, %s6201_s17  ;;  %2973 = vrot.lane.b32.xlu0 %v5689_v25, %s4564_s26  ;;  %s4495_s26 = scalar_lea.vmem %s6128_s13, 256 }
 0x3f9   : > { %p4496_p11 = scmp.ne.s32.totalorder %s6128_s13, %s4495_s26 }
 0x3fb   : > { %p4497_p12 = pnand %p4496_p11, %p4653_p5 }
 0x3fc   : > { %2938 = vrot.lane.b32.xlu1 %v5683_v23, %s4566_s12  ;;  %3551 = vrot.lane.b32.xlu0 %v5617_v53, %s6201_s17 }
 0x3fd   : > { %p4498_p13 = pneg %p4497_p12 }
 0x400   : > { %3153 = vrot.lane.b32.xlu1 %v5683_v23, %s4560_s22  ;;  %2940 = vrot.lane.b32.xlu0 %v5689_v25, %s4566_s12  ;;  %s4569_s12 = smov [#allocation2]  }
 0x404   : > { %3263 = vrot.lane.b32.xlu1 %v5683_v23, %s4561_s23  ;;  %3559 = vrot.lane.b32.xlu0 %v5641_v8, %s6201_s17 }
 0x408   : > { %3451 = vrot.lane.b32.xlu1 %v5683_v23, %s6204_s20  ;;  %3155 = vrot.lane.b32.xlu0 %v5689_v25, %s4560_s22 }
 0x40c   : > { %3557 = vrot.lane.b32.xlu1 %v5635_v61, %s6201_s17  ;;  %3555 = vrot.lane.b32.xlu0 %v5665_v13, %s6201_s17 }
 0x410   : > { %3553 = vrot.lane.b32.xlu1 %v5659_v1, %s6201_s17  ;;  %3265 = vrot.lane.b32.xlu0 %v5689_v25, %s4561_s23  ;;  %s6126_s23 = scalar_lea.hbm %s6176_s8, %s4154_s10 }
 0x414   : > { %3561 = vrot.lane.b32.xlu1 %v5683_v23, %s6201_s17  ;;  %3661 = vrot.lane.b32.xlu0 %v5617_v53, %s6202_s18 }
 0x418   : > { %3659 = vrot.lane.b32.xlu1 %v5613_v50, %s6202_s18  ;;  %3669 = vrot.lane.b32.xlu0 %v5641_v8, %s6202_s18 }
 0x41c   : > { %3667 = vrot.lane.b32.xlu1 %v5635_v61, %s6202_s18  ;;  %3665 = vrot.lane.b32.xlu0 %v5665_v13, %s6202_s18 }
 0x420   : > { %3663 = vrot.lane.b32.xlu1 %v5659_v1, %s6202_s18  ;;  %3453 = vrot.lane.b32.xlu0 %v5689_v25, %s6204_s20 }
 0x424   : > { %3671 = vrot.lane.b32.xlu1 %v5683_v23, %s6202_s18  ;;  %3771 = vrot.lane.b32.xlu0 %v5617_v53, %s6203_s19 }
 0x428   : > { %3769 = vrot.lane.b32.xlu1 %v5613_v50, %s6203_s19  ;;  %3563 = vrot.lane.b32.xlu0 %v5689_v25, %s6201_s17  ;;  %s4499_s17 = sshll.u32 %s4569_s12, 4  ;;  %s4500_s17 = int_to_ptr.vmem [resolvable:$false] %s4499_s17 }
 0x429   : > { %p4502_p0 = scmp.lt.s32.totalorder %s6128_s13, %s4500_s17 }
 0x42a   : > { %v2960_v26 = vpop.permute.xlu1 %2959 }
 0x42c   : > { %3777 = vrot.lane.b32.xlu1 %v5635_v61, %s6203_s19  ;;  %3779 = vrot.lane.b32.xlu0 %v5641_v8, %s6203_s19 }
 0x42e   : > { %v5747_v27 = vpop.permute.xlu1 %2926  ;;  %v2962_v28 = vpop.permute.xlu0 %2961 }
 0x430   : > { %3773 = vrot.lane.b32.xlu1 %v5659_v1, %s6203_s19  ;;  %3673 = vrot.lane.b32.xlu0 %v5689_v25, %s6202_s18  ;;  %s4501_s18 = scalar_lea.vmem %s4500_s17, 512 }
 0x431   : > { %p4503_p1 = scmp.lt.s32.totalorder %s4501_s18, %s4495_s26 }
 0x432   : > { %v5753_v29 = vpop.permute.xlu1 %3141  ;;  %v5755_v30 = vpop.permute.xlu0 %2928 }
 0x433   : > { %p4504_p2 = por %p4503_p1, %p4502_p0 }
 0x434   : > { %3781 = vrot.lane.b32.xlu1 %v5683_v23, %s6203_s19  ;;  %3775 = vrot.lane.b32.xlu0 %v5665_v13, %s6203_s19 }
 0x435   : > { %p4505_p3 = pnand %p4504_p2, %p4498_p13 }
 0x436   : > { %v3252_v34 = vpop.permute.xlu1 %3251  ;;  %v5764_v35 = vpop.permute.xlu0 %3143 }
 0x438   : > { %3882 = vperm.xlu1 %4493, %v3879_v32   ;;  %3783 = vrot.lane.b32.xlu0 %v5689_v25, %s6203_s19 }
 0x43a   : > { %v3440_v40 = vpop.permute.xlu1 %3439  ;;  %v3254_v36 = vpop.permute.xlu0 %3253 }
 0x43e   : > { %v2968_v41 = vpop.permute.xlu1 %2967  ;;  %v3442_v42 = vpop.permute.xlu0 %3441 }
 0x43f   : > { %v2975_v43 = vsel %vm353_vm4, %v2960_v26, %v2968_v41  ;;  %v2979_v44 = vsel %vm353_vm4, %v2968_v41, %v2960_v26 }
 0x440   : > { %v2983_v2 = vmul.f32 %v2979_v44, %v4786_v38  ;;  %v2984_v12 = vmul.f32 %v2975_v43, %v4789_v39 }
 0x442   : > { %v5772_v45 = vpop.permute.xlu1 %2934  ;;  %v2970_v47 = vpop.permute.xlu0 %2969 }
 0x443   : > { %v2976_v49 = vsel %vm353_vm4, %v2962_v28, %v2970_v47  ;;  %v2980_v54 = vsel %vm353_vm4, %v2970_v47, %v2962_v28 }
 0x444   : > { %v2985_v52 = vmul.f32 %v2980_v54, %v4786_v38  ;;  %v2986_v58 = vmul.f32 %v2976_v49, %v4789_v39 }
 0x446   : > { %v4229_v37 = vpack.c.bf16 %v2985_v52, %v2983_v2  ;;  %v5782_v56 = vpop.permute.xlu1 %3149  ;;  %v2937_v7 = vpop.permute.xlu0 %2936  ;;  %v4227_v14 = vpack.c.bf16 %v2986_v58, %v2984_v12 }
 0x447   : > { %v3161_v59 = vsel %vm594_vm0, %v5782_v56, %v5753_v29 }
 0x448   : > { %4228 = vmatprep.subr.bf16.mxu0 %v4227_v14  ;;  %v5792_v63 = vmul.f32 %v3161_v59, %v4738_v18 }
 0x449   : > { %4230 = vmatpush1.bf16.msra.mxu0 %v4229_v37 }
 0x44a   : > { %v3260_v3 = vpop.permute.xlu1 %3259  ;;  %v3152_v11 = vpop.permute.xlu0 %3151 }
 0x44b   : > { %v3162_v62 = vsel %vm594_vm0, %v3152_v11, %v5764_v35  ;;  %v3267_v5 = vsel %vm734_vm1, %v3252_v34, %v3260_v3  ;;  %v3271_v6 = vsel %vm734_vm1, %v3260_v3, %v3252_v34 }
 0x44c   : > { %v5795_v4 = vmul.f32 %v3162_v62, %v4738_v18  ;;  %v5808_v28 = vmul.f32 %v3271_v6, %v4744_v20  ;;  %v5811_v32 = vmul.f32 %v3267_v5, %v4735_v17 }
 0x44e   : > { %v3448_v21 = vpop.permute.xlu1 %3447  ;;  %v3262_v22 = vpop.permute.xlu0 %3261 }
 0x44f   : > { %v3268_v24 = vsel %vm734_vm1, %v3254_v36, %v3262_v22  ;;  %v3272_v26 = vsel %vm734_vm1, %v3262_v22, %v3254_v36  ;;  %v3455_v43 = vsel %vm992_vm5, %v3440_v40, %v3448_v21  ;;  %v3459_v44 = vsel %vm992_vm5, %v3448_v21, %v3440_v40 }
 0x450   : > { %v5814_v41 = vmul.f32 %v3272_v26, %v4744_v20  ;;  %v5817_v34 = vmul.f32 %v3268_v24, %v4735_v17  ;;  %v5832_v52 = vmul.f32 %v3455_v43, %v4889_v9  ;;  %v5835_v58 = vmul.f32 %v3459_v44, %v4817_v51 }
 0x451   : > { %v2943_v44 = vsel %vm329_vm6, %v5755_v30, %v2937_v7  ;;  %v2947_v36 = vsel %vm329_vm6, %v2937_v7, %v5755_v30  ;;  %v2946_v30 = vsel %vm329_vm6, %v5772_v45, %v5747_v27 }
 0x452   : > { %v2964_v47 = vpop.permute.xlu1 %2963  ;;  %v3450_v49 = vpop.permute.xlu0 %3449  ;;  %v2953_v54 = vmul.f32 %v2943_v44, %v4833_v55 }
 0x453   : > { %v3456_v2 = vsel %vm992_vm5, %v3442_v42, %v3450_v49  ;;  %v3460_v12 = vsel %vm992_vm5, %v3450_v49, %v3442_v42 }
 0x454   : > { %v5838_v40 = vmul.f32 %v3456_v2, %v4889_v9  ;;  %v5841_v37 = vmul.f32 %v3460_v12, %v4817_v51  ;;  %v2942_v12 = vsel %vm329_vm6, %v5747_v27, %v5772_v45 }
 0x455   : > { %v2951_v7 = vmul.f32 %v2942_v12, %v4833_v55 }
 0x456   : > { %v2931_v59 = vpop.permute.xlu1 %2930  ;;  %v2966_v3 = vpop.permute.xlu0 %2965 }
 0x45a   : > { %v3146_v62 = vpop.permute.xlu1 %3145  ;;  %v2933_v5 = vpop.permute.xlu0 %2932 }
 0x45e   : > { %v5847_v6 = vpop.permute.xlu1 %3255  ;;  %v5849_v21 = vpop.permute.xlu0 %3147 }
 0x462   : > { %v5851_v22 = vpop.permute.xlu1 %3443  ;;  %v5853_v24 = vpop.permute.xlu0 %3257 }
 0x466   : > { %v2972_v26 = vpop.permute.xlu1 %2971  ;;  %v5855_v43 = vpop.permute.xlu0 %3445 }
 0x467   : > { %v2977_v49 = vsel %vm353_vm4, %v2964_v47, %v2972_v26  ;;  %v2981_v2 = vsel %vm353_vm4, %v2972_v26, %v2964_v47 }
 0x468   : > { %v2987_v26 = vmul.f32 %v2981_v2, %v4786_v38  ;;  %v2988_v0 = vmul.f32 %v2977_v49, %v4789_v39 }
 0x46a   : > { %v5868_v14 = vpop.permute.xlu1 %3549  ;;  %v2974_v42 = vpop.permute.xlu0 %2973 }
 0x46b   : > { %v2978_v16 = vsel %vm353_vm4, %v2966_v3, %v2974_v42  ;;  %v2982_v47 = vsel %vm353_vm4, %v2974_v42, %v2966_v3  ;;  %v2952_v42 = vmul.f32 %v2947_v36, %v4845_v60 }
 0x46c   : > { %v2989_v57 = vmul.f32 %v2982_v47, %v4786_v38  ;;  %v2990_v48 = vmul.f32 %v2978_v16, %v4789_v39  ;;  %v3158_v38 = vsel %vm594_vm0, %v5764_v35, %v3152_v11  ;;  %v4235_v39 = vpack.c.bf16 %v2953_v54, %v2951_v7 }
 0x46d   : > { %v2950_v16 = vmul.f32 %v2946_v30, %v4845_v60  ;;  %v3168_v36 = vmul.f32 %v3158_v38, %v4741_v19 }
 0x46e   : > { %v4233_v44 = vpack.c.bf16 %v2989_v57, %v2987_v26  ;;  %v2939_v46 = vpop.permute.xlu1 %2938  ;;  %v5887_v33 = vpop.permute.xlu0 %3551  ;;  %v4231_v3 = vpack.c.bf16 %v2990_v48, %v2988_v0  ;;  %v4131_v0 = vld [vmem:[%s6174_s6 + $0x8] sm:$0xff]  ;;  %v3157_v48 = vsel %vm594_vm0, %v5753_v29, %v5782_v56  ;;  %v6205_v56 = vmov 0.0  }
 0x46f   : > { %v2944_v27 = vsel %vm329_vm6, %v2931_v59, %v2939_v46  ;;  %v2948_v57 = vsel %vm329_vm6, %v2939_v46, %v2931_v59  ;;  %v4237_v11 = vpack.c.bf16 %v2952_v42, %v2950_v16  ;;  %v3166_v12 = vmul.f32 %v3157_v48, %v4741_v19 }
 0x470   : > { %4232 = vmatprep.subr.bf16.mxu0 %v4231_v3  ;;  %v2954_v59 = vmul.f32 %v2948_v57, %v4845_v60  ;;  %v2955_v49 = vmul.f32 %v2944_v27, %v4833_v55 }
 0x471   : > { %4234 = vmatpush1.bf16.msra.mxu0 %v4233_v44  ;;  %v4243_v7 = vpack.c.bf16 %v3168_v36, %v3166_v12 }
 0x472   : > { %v3154_v35 = vpop.permute.xlu1 %3153  ;;  %4236 = vmatprep.subr.bf16.mxu0 %v4235_v39  ;;  %v2941_v45 = vpop.permute.xlu0 %2940 }
 0x473   : > { %v2945_v54 = vsel %vm329_vm6, %v2933_v5, %v2941_v45  ;;  %v2949_v46 = vsel %vm329_vm6, %v2941_v45, %v2933_v5  ;;  %v3159_v44 = vsel %vm594_vm0, %v3146_v62, %v3154_v35 }
 0x474   : > { %v2956_v2 = vmul.f32 %v2949_v46, %v4845_v60  ;;  %v2957_v29 = vmul.f32 %v2945_v54, %v4833_v55  ;;  %4132 = vmatmul.mubr.msk.f32.vlgmr.msra.gmra.mrb[8].mxu0 %vm1677_vm10, %v4131_v0  ;;  %v3163_v55 = vsel %vm594_vm0, %v3154_v35, %v3146_v62  ;;  %v2958_v60 = vld [vmem:[%s6174_s6] sm:$0xff]  ;;  %v3170_v62 = vmul.f32 %v3159_v44, %v4741_v19 }
 0x475   : > { %4238 = vmatpush1.bf16.msra.mxu0 %v4237_v11  ;;  %3134 = vmatprep.mubr.f32.mxu0 %v6205_v56  ;;  %v3169_v16 = vmul.f32 %v3163_v55, %v4738_v18  ;;  %v6206_v0 = vpack.c.bf16 %v5795_v4, %v5792_v63  ;;  %v4134_v63 = vld [vmem:[%s6174_s6 + $0x10] sm:$0xff]  ;;  %v6207_v11 = vpack.c.bf16 %v5817_v34, %v5811_v32 }
 0x476   : > { %v4241_v47 = vpack.c.bf16 %v2956_v2, %v2954_v59  ;;  %v3264_v26 = vpop.permute.xlu1 %3263  ;;  %v5917_v30 = vpop.permute.xlu0 %3559  ;;  %v4239_v5 = vpack.c.bf16 %v2957_v29, %v2955_v49  ;;  %v6208_v32 = vpack.c.bf16 %v5814_v41, %v5808_v28  ;;  %v4261_v41 = vpack.c.bf16 %v5617_v53, %v5613_v50 }
 0x478   : > { %4240 = vmatprep.subr.bf16.mxu0 %v4239_v5  ;;  %v4265_v5 = vpack.c.bf16 %v5665_v13, %v5659_v1  ;;  %v3570_v1 = vsel %vm1132_vm7, %v5917_v30, %v5887_v33 }
 0x479   : > { %4242 = vmatpush1.bf16.msra.mxu0 %v4241_v47  ;;  %v4259_v47 = vpack.c.bf16 %v5641_v8, %v5635_v61 }
 0x47a   : > { %v3452_v3 = vpop.permute.xlu1 %3451  ;;  %4244 = vmatprep.subr.bf16.mxu0 %v4243_v7  ;;  %v3156_v42 = vpop.permute.xlu0 %3155 }
 0x47b   : > { %v3160_v38 = vsel %vm594_vm0, %v5849_v21, %v3156_v42  ;;  %v3164_v39 = vsel %vm594_vm0, %v3156_v42, %v5849_v21  ;;  %v3457_v7 = vsel %vm992_vm5, %v5851_v22, %v3452_v3  ;;  %v3461_v50 = vsel %vm992_vm5, %v3452_v3, %v5851_v22 }
 0x47c   : > { %v3171_v27 = vmul.f32 %v3164_v39, %v4738_v18  ;;  %v3172_v57 = vmul.f32 %v3160_v38, %v4741_v19  ;;  %4133 = vmatmul.mubr.msk.f32.vlgmr.msra.gmra.mrb[8].mxu0 %vm1677_vm10, %v2958_v60  ;;  %v3269_v18 = vsel %vm734_vm1, %v5847_v6, %v3264_v26  ;;  %v3273_v19 = vsel %vm734_vm1, %v3264_v26, %v5847_v6 }
 0x47d   : > { %4246 = vmatpush1.bf16.msra.mxu0 %v6206_v0  ;;  %3242 = vmatprep.mubr.f32.mxu0 %v6205_v56  ;;  %v3279_v46 = vmul.f32 %v3273_v19, %v4744_v20  ;;  %v3280_v59 = vmul.f32 %v3269_v18, %v4735_v17  ;;  %v4263_v26 = vpack.c.bf16 %v5689_v25, %v5683_v23  ;;  %v4138_v23 = vld [vmem:[%s6174_s6 + $0x20] sm:$0xff]  ;;  %v4140_v0 = vld [vmem:[%s6174_s6 + $0x28] sm:$0xff] }
 0x47e   : > { %v4249_v48 = vpack.c.bf16 %v3171_v27, %v3169_v16  ;;  %v3558_v35 = vpop.permute.xlu1 %3557  ;;  %v5941_v45 = vpop.permute.xlu0 %3555  ;;  %v4247_v21 = vpack.c.bf16 %v3172_v57, %v3170_v62  ;;  %v6209_v25 = vpack.c.bf16 %v5841_v37, %v5835_v58  ;;  %v3467_v44 = vmul.f32 %v3457_v7, %v4889_v9 }
 0x47f   : > { %v3569_v53 = vsel %vm1132_vm7, %v3558_v35, %v5868_v14  ;;  %v3565_v55 = vsel %vm1132_vm7, %v5868_v14, %v3558_v35  ;;  %v3468_v42 = vmul.f32 %v3461_v50, %v4817_v51  ;;  %v3566_v14 = vsel %vm1132_vm7, %v5887_v33, %v5917_v30 }
 0x480   : > { %4248 = vmatprep.subr.bf16.mxu0 %v4247_v21  ;;  %v3574_v58 = vmul.f32 %v3569_v53, %v4900_v15  ;;  %v6210_v39 = vpack.c.bf16 %v5838_v40, %v5832_v52  ;;  %v3573_v16 = vmul.f32 %v3565_v55, %v4951_v31  ;;  %v3575_v33 = vmul.f32 %v3566_v14, %v4951_v31 }
 0x481   : > { %4250 = vmatpush1.bf16.msra.mxu0 %v4249_v48 }
 0x482   : > { %v5952_v4 = vpop.permute.xlu1 %3553  ;;  %4252 = vmatprep.subr.bf16.mxu0 %v6207_v11  ;;  %v3266_v36 = vpop.permute.xlu0 %3265  ;;  %v4277_v48 = vpack.c.bf16 %v3575_v33, %v3573_v16 }
 0x483   : > { %v3270_v54 = vsel %vm734_vm1, %v5853_v24, %v3266_v36  ;;  %v3274_v6 = vsel %vm734_vm1, %v3266_v36, %v5853_v24 }
 0x484   : > { %v3281_v49 = vmul.f32 %v3274_v6, %v4744_v20  ;;  %v3282_v2 = vmul.f32 %v3270_v54, %v4735_v17  ;;  %4135 = vmatmul.mubr.msk.f32.vlgmr.msra.gmra.mrb[8].mxu0 %vm1677_vm10, %v4134_v63  ;;  %v4136_v17 = vld [vmem:[%s6174_s6 + $0x18] sm:$0xff]  ;;  %v6211_v54 = vld [vmem:[#allocation5_spill] sm:$0xff] }
 0x485   : > { %4254 = vmatpush1.bf16.msra.mxu0 %v6208_v32  ;;  %3352 = vmatprep.mubr.f32.mxu0 %v6205_v56 }
 0x486   : > { %v4257_v34 = vpack.c.bf16 %v3281_v49, %v3279_v46  ;;  %v3562_v29 = vpop.permute.xlu1 %3561  ;;  %v5972_v12 = vpop.permute.xlu0 %3661  ;;  %v4255_v24 = vpack.c.bf16 %v3282_v2, %v3280_v59 }
 0x487   : > { %v3567_v57 = vsel %vm1132_vm7, %v5952_v4, %v3562_v29  ;;  %v3571_v52 = vsel %vm1132_vm7, %v3562_v29, %v5952_v4 }
 0x488   : > { %4256 = vmatprep.subr.bf16.mxu0 %v4255_v24  ;;  %v3577_v35 = vmul.f32 %v3567_v57, %v4951_v31  ;;  %v3578_v36 = vmul.f32 %v3571_v52, %v4900_v15 }
 0x489   : > { %4258 = vmatpush1.bf16.msra.mxu0 %v4257_v34 }
 0x48a   : > { %v3660_v20 = vpop.permute.xlu1 %3659  ;;  %4260 = vmatprep.subr.bf16.mxu0 %v4259_v47  ;;  %v3670_v28 = vpop.permute.xlu0 %3669 }
 0x48b   : > { %v3680_v19 = vsel %vm1272_vm8, %v3670_v28, %v5972_v12  ;;  %v3676_v49 = vsel %vm1272_vm8, %v5972_v12, %v3670_v28 }
 0x48c   : > { %4137 = vmatmul.mubr.msk.f32.vlgmr.msra.gmra.mrb[8].mxu0 %vm1677_vm10, %v4136_v17  ;;  %v3686_v2 = vmul.f32 %v3680_v19, %v6211_v54 }
 0x48d   : > { %4262 = vmatpush1.bf16.msra.mxu0 %v4261_v41  ;;  %3430 = vmatprep.mubr.f32.mxu0 %v6205_v56  ;;  %v4142_v41 = vld [vmem:[%s6174_s6 + $0x30] sm:$0xff] }
 0x48e   : > { %v3668_v61 = vpop.permute.xlu1 %3667  ;;  %4264 = vmatprep.subr.bf16.mxu0 %v4263_v26  ;;  %v5985_v8 = vpop.permute.xlu0 %3665 }
 0x48f   : > { %v3679_v40 = vsel %vm1272_vm8, %v3668_v61, %v3660_v20  ;;  %v3675_v63 = vsel %vm1272_vm8, %v3660_v20, %v3668_v61 }
 0x490   : > { %v3684_v6 = vmul.f32 %v3679_v40, %v6211_v54 }
 0x491   : > { %4266 = vmatpush1.bf16.msra.mxu0 %v4265_v5 }
 0x492   : > { %v3664_v13 = vpop.permute.xlu1 %3663  ;;  %4268 = vmatprep.subr.bf16.mxu0 %v6209_v25  ;;  %v3454_v22 = vpop.permute.xlu0 %3453  ;;  %v4283_v12 = vpack.c.bf16 %v3686_v2, %v3684_v6  ;;  %v6213_v25 = vld [vmem:[#allocation7_spill] sm:$0xff] }
 0x493   : > { %v3458_v60 = vsel %vm992_vm5, %v5855_v43, %v3454_v22  ;;  %v3462_v3 = vsel %vm992_vm5, %v3454_v22, %v5855_v43  ;;  %v3576_v43 = vmul.f32 %v3570_v1, %v4900_v15 }
 0x494   : > { %v3469_v37 = vmul.f32 %v3458_v60, %v4889_v9  ;;  %v3470_v38 = vmul.f32 %v3462_v3, %v4817_v51  ;;  %4139 = vmatmul.mubr.msk.f32.vlgmr.msra.gmra.mrb[8].mxu0 %vm1677_vm10, %v4138_v23 }
 0x495   : > { %4270 = vmatpush1.bf16.msra.mxu0 %v6210_v39  ;;  %3540 = vmatprep.mubr.f32.mxu0 %v6205_v56  ;;  %v4275_v30 = vpack.c.bf16 %v3576_v43, %v3574_v58 }
 0x496   : > { %v4273_v9 = vpack.c.bf16 %v3469_v37, %v3467_v44  ;;  %v3672_v62 = vpop.permute.xlu1 %3671  ;;  %v3772_v51 = vpop.permute.xlu0 %3771  ;;  %v4271_v27 = vpack.c.bf16 %v3470_v38, %v3468_v42  ;;  %v6214_v38 = vld [vmem:[#allocation8_spill] sm:$0xff] }
 0x498   : > { %4272 = vmatprep.subr.bf16.mxu0 %v4271_v27 }
 0x499   : > { %4274 = vmatpush1.bf16.msra.mxu0 %v4273_v9  ;;  %v4144_v9 = vld [vmem:[%s6174_s6 + $0x38] sm:$0xff] }
 0x49a   : > { %v3770_v21 = vpop.permute.xlu1 %3769  ;;  %4276 = vmatprep.subr.bf16.mxu0 %v4275_v30  ;;  %v3564_v18 = vpop.permute.xlu0 %3563 }
 0x49b   : > { %v3568_v4 = vsel %vm1132_vm7, %v5941_v45, %v3564_v18  ;;  %v3572_v11 = vsel %vm1132_vm7, %v3564_v18, %v5941_v45  ;;  %v6212_v45 = vld [vmem:[#allocation6_spill] sm:$0xff] }
 0x49c   : > { %v3579_v46 = vmul.f32 %v3568_v4, %v4951_v31  ;;  %v3580_v59 = vmul.f32 %v3572_v11, %v4900_v15  ;;  %4141 = vmatmul.mubr.msk.f32.vlgmr.msra.gmra.mrb[8].mxu0 %vm1677_vm10, %v4140_v0  ;;  %v3683_v32 = vmul.f32 %v3675_v63, %v6212_v45  ;;  %v3677_v15 = vsel %vm1272_vm8, %v3664_v13, %v3672_v62 }
 0x49d   : > { %4278 = vmatpush1.bf16.msra.mxu0 %v4277_v48  ;;  %3650 = vmatprep.mubr.f32.mxu0 %v6205_v56  ;;  %v3681_v31 = vsel %vm1272_vm8, %v3672_v62, %v3664_v13  ;;  %v3685_v17 = vmul.f32 %v3676_v49, %v6212_v45  ;;  %v3687_v61 = vmul.f32 %v3677_v15, %v6212_v45 }
 0x49e   : > { %v4281_v34 = vpack.c.bf16 %v3579_v46, %v3577_v35  ;;  %v3778_v29 = vpop.permute.xlu1 %3777  ;;  %v3780_v24 = vpop.permute.xlu0 %3779  ;;  %v4279_v47 = vpack.c.bf16 %v3580_v59, %v3578_v36  ;;  %v3688_v5 = vmul.f32 %v3681_v31, %v6211_v54 }
 0x49f   : > { %v3789_v20 = vsel %vm1412_vm9, %v3778_v29, %v3770_v21  ;;  %v3790_v28 = vsel %vm1412_vm9, %v3780_v24, %v3772_v51  ;;  %v4285_v26 = vpack.c.bf16 %v3685_v17, %v3683_v32  ;;  %v3785_v53 = vsel %vm1412_vm9, %v3770_v21, %v3778_v29 }
 0x4a0   : > { %4280 = vmatprep.subr.bf16.mxu0 %v4279_v47  ;;  %v3786_v23 = vsel %vm1412_vm9, %v3772_v51, %v3780_v24  ;;  %v3794_v22 = vmul.f32 %v3789_v20, %v6213_v25  ;;  %v3796_v44 = vmul.f32 %v3790_v28, %v6213_v25  ;;  %v3793_v14 = vmul.f32 %v3785_v53, %v6214_v38 }
 0x4a1   : > { %4282 = vmatpush1.bf16.msra.mxu0 %v4281_v34 }
 0x4a2   : > { %v3774_v7 = vpop.permute.xlu1 %3773  ;;  %4284 = vmatprep.subr.bf16.mxu0 %v4283_v12  ;;  %v3674_v50 = vpop.permute.xlu0 %3673  ;;  %v4291_v39 = vpack.c.bf16 %v3796_v44, %v3794_v22 }
 0x4a3   : > { %v3678_v1 = vsel %vm1272_vm8, %v5985_v8, %v3674_v50  ;;  %v3682_v13 = vsel %vm1272_vm8, %v3674_v50, %v5985_v8  ;;  %v3795_v8 = vmul.f32 %v3786_v23, %v6214_v38 }
 0x4a4   : > { %v3689_v55 = vmul.f32 %v3678_v1, %v6212_v45  ;;  %v3690_v60 = vmul.f32 %v3682_v13, %v6211_v54  ;;  %4143 = vmatmul.mubr.msk.f32.vlgmr.msra.gmra.mrb[8].mxu0 %vm1677_vm10, %v4142_v41 }
 0x4a5   : > { %4286 = vmatpush1.bf16.msra.mxu0 %v4285_v26  ;;  %3760 = vmatprep.mubr.f32.mxu0 %v6205_v56  ;;  %v4293_v51 = vpack.c.bf16 %v3795_v8, %v3793_v14 }
 0x4a6   : > { %v4289_v3 = vpack.c.bf16 %v3689_v55, %v3687_v61  ;;  %v3782_v42 = vpop.permute.xlu1 %3781  ;;  %v3776_v58 = vpop.permute.xlu0 %3775  ;;  %v4287_v37 = vpack.c.bf16 %v3690_v60, %v3688_v5 }
 0x4a7   : > { %v3787_v43 = vsel %vm1412_vm9, %v3774_v7, %v3782_v42  ;;  %v3791_v16 = vsel %vm1412_vm9, %v3782_v42, %v3774_v7 }
 0x4a8   : > { %4288 = vmatprep.subr.bf16.mxu0 %v4287_v37  ;;  %v3797_v33 = vmul.f32 %v3787_v43, %v6214_v38  ;;  %v3798_v30 = vmul.f32 %v3791_v16, %v6213_v25 }
 0x4a9   : > { %4290 = vmatpush1.bf16.msra.mxu0 %v4289_v3 }
 0x4aa   : > { %4292 = vmatprep.subr.bf16.mxu0 %v4291_v39  ;;  %v3784_v62 = vpop.permute.xlu0 %3783 }
 0x4ab   : > { %v3788_v27 = vsel %vm1412_vm9, %v3776_v58, %v3784_v62  ;;  %v3792_v57 = vsel %vm1412_vm9, %v3784_v62, %v3776_v58 }
 0x4ac   : > { %v3799_v52 = vmul.f32 %v3788_v27, %v6214_v38  ;;  %v3800_v40 = vmul.f32 %v3792_v57, %v6213_v25  ;;  %4145 = vmatmul.mubr.msk.f32.vlgmr.msra.gmra.mrb[8].mxu0 %vm1677_vm10, %v4144_v9 }
 0x4ad   : > { %4294 = vmatpush1.bf16.msra.mxu0 %v4293_v51  ;;  %3870 = vmatprep.mubr.f32.mxu0 %v6205_v56 }
 0x4ae   : > { %v4297_v0 = vpack.c.bf16 %v3799_v52, %v3797_v33  ;;  %v4295_v48 = vpack.c.bf16 %v3800_v40, %v3798_v30 }
 0x4b0   : > { %4296 = vmatprep.subr.bf16.mxu0 %v4295_v48 }
 0x4b1   : > { %4298 = vmatpush1.bf16.msra.mxu0 %v4297_v0 }
 0x4b4   : > { %4147 = vmatmul.mubr.msk.f32.vlgmr.msra.gmra.mrb[8].mxu0 %vm1677_vm10, %v4146_v10 }
 0x4b7   : > { %v3883_v35 = vpop.permute.xlu1 %3882 }
 0x587   : > { %v3872_v21 = vpop.f32.mrb[8].mxu0 }
 0x588   : > { %v3885_v18 = vadd.f32 %v3883_v35, %v3872_v21  ;;  %v3874_v56 = vpop.f32.mrb[9].mxu0 }
 0x589   : > { %v3886_v19 = vadd.f32 %v3883_v35, %v3874_v56 }
 0x58a   : > { %3887 = vst [vmem:[%s298_s25] sm:$0xff] %v3885_v18 }
 0x58b   : > { %3888 = vst [vmem:[%s298_s25 + $0x8] sm:$0xff] %v3886_v19 }
 0x58c   : > { %4508 = shalt.err (!%p4505_p3)
}
 0x58d   : > { %s4509_s19 = scalar_lea.hbm %s6126_s23, 256  ;;  %s4513_s10 = scalar_lea.hbm %s6176_s8, 512 }
 0x58e   : > { %p4510_p4 = scmp.ne.s32.totalorder %s6126_s23, %s4509_s19  ;;  %p4514_p9 = scmp.lt.u32.totalorder %s6126_s23, %s6176_s8 }
 0x58f   : > { %p4515_p10 = scmp.lt.u32.totalorder %s4513_s10, %s4509_s19  ;;  %p4517_p12 = scmp.lt.u32.totalorder %s4509_s19, %s6126_s23 }
 0x590   : > { %p4511_p7 = pnand %p4510_p4, %p4653_p5 }
 0x591   : > { %p4516_p11 = por %p4515_p10, %p4514_p9 }
 0x592   : > { %p4512_p8 = pneg %p4511_p7 }
 0x593   : > { %p4518_p13 = por %p4517_p12, %p4516_p11 }
 0x595   : > { %p4519_p0 = pnand %p4518_p13, %p4512_p8 }
 0x597   : > { %4522 = shalt.err (!%p4519_p0)
}
 0x598   : > { %4443 = dma.vmem_to_hbm [thread:$0]  (%p4653_p5), %s6128_s13, 256, %s6126_s23, %s3890_s9  }
 0x599 PF: > { %p4449_p1 = scmp.ge.s32.totalorder %s4557_s30, 2  ;;  %s3916_s22 = sand.u32 1, %s4545_s27  }
 0x59a   : > { %s3917_s26 = scalar_lea.sflag [#allocation3], %s3916_s22 }
 0x59b   : > { %p4446_p2 = pnand %p4449_p1, %p4657_p6 }
 0x59d   : > { %4540 = dma.done.wait (!%p4446_p2), %s3917_s26, 256  }
 0x59e   : > { %4542 = vsyncadd (!%p4446_p2), %s3917_s26, 4294967040  ;;  %p18_p3 = scmp.ge.s32.totalorder %s4640_s11, 4   ;;  %s6215_s27 = smov %s4549_s28 }
 0x59f   : > { %s6216_s28 = smov %s4553_s29  ;;  %s6217_s29 = smov %s4651_s14 }
 0x5a0   : > { %s6218_s30 = smov %s4640_s11  ;;  %20 = sbr.rel (!%p18_p3) target bundleno = 3 (0x3), region = 118 }
 0x5a7   :  { %3922 = vsyncpa [#allocation3], 1 }
 0x5a8   :  { %3924 = vsyncpa [#allocation3 + $0x1], 1 }

</bundles_post_ra>
